<compile_context>
chip_gen: v7x
topology: tpu7x:2x2x1
jax: 0.10.0
libtpu: 0.0.40
codegen_flags: <defaults>
</compile_context>

<pallas_src>
import math

import jax
import jax.numpy as jnp
from jax.experimental import pallas as pl
from jax.experimental.pallas import tpu as pltpu

EPS = 1e-5


# ----------------------------- small helpers -----------------------------
def _sigmoid(v):
    return 1.0 / (1.0 + jnp.exp(-v))


def _silu(v):
    return v * _sigmoid(v)


def _softplus(v):
    # matches torch.nn.functional.softplus (beta=1, threshold=20)
    return jnp.where(v > 20.0, v, jnp.log(1.0 + jnp.exp(v)))


def _device_kind():
    try:
        return jax.devices()[0].device_kind.lower()
    except Exception:  # pragma: no cover
        return ""


def _pick_batch_block(B, L, kind=None):
    """Batch elements packed per grid step (generation-aware).

    v5e/v6e (1 TensorCore): maximize rows so the layer-stacked weights are
    streamed from HBM as few times as possible (ideally nb == 1).
    v7x (2 TensorCores): keep >= 2 'parallel' batch blocks to feed both TCs.
    """
    kind = _device_kind() if kind is None else kind
    is_v7 = "v7" in kind
    target_rows = 256 if is_v7 else 512
    bb = max(1, min(B, max(1, target_rows // max(1, L))))
    if is_v7 and B >= 2:
        bb = max(1, min(bb, B // 2))
    while B % bb != 0:
        bb -= 1
    return bb


def _pick_vmem_limit(kind=None):
    kind = _device_kind() if kind is None else kind
    if "v7" in kind:
        return 48 * 1024 * 1024          # v7x: 64 MiB physical VMEM
    if "v5" in kind or "v6" in kind:
        return 100 * 1024 * 1024         # v5e/v6e: 128 MiB physical VMEM
    return None                          # unknown generation -> compiler default


def _small_layout(d_conv, d_state):
    """Row layout of the packed per-layer 'small parameter' bundle (lane width = d_inner)."""
    return dict(conv_w0=0,
                conv_b=d_conv,
                dt_b=d_conv + 1,
                d_row=d_conv + 2,
                norm_w=d_conv + 3,
                a0=d_conv + 4,
                n_small=d_conv + 4 + d_state)


# ----------------------------- fused full-model kernel -----------------------------
def make_fused_kernel(*, L, bb, d_model, d_inner, d_state, dt_rank, d_conv, eps=EPS):
    rows = bb * L
    lay = _small_layout(d_conv, d_state)

    def kernel(x_ref, in_w_ref, in_b_ref, tri_i_ref, tri_s_ref, ckeep_ref,
               small_ref, wx_ref, wr_ref, xprojw_ref, dtw_ref, outw_ref,
               normfw_ref, headw_ref, headb_ref, o_ref, h_scr):
        layer = pl.program_id(1)
        n_layers = pl.num_programs(1)

        # ---- layer 0: input embedding -> resident residual stream (VMEM scratch) ----
        @pl.when(layer == 0)
        def _init():
            x16 = x_ref[0].astype(jnp.bfloat16)
            h_scr[...] = (jnp.dot(x16, in_w_ref[...],
                                  preferred_element_type=jnp.float32)
                          + in_b_ref[...])

        h_prev = h_scr[...]                                   # (rows, d_model) f32
        small = small_ref[0]                                  # (n_small, d_inner) f32

        # ---- RMSNorm ----
        norm_w = small[lay['norm_w']:lay['norm_w'] + 1, :d_model]
        ms = jnp.mean(h_prev * h_prev, axis=-1, keepdims=True)
        xn = (h_prev * jax.lax.rsqrt(ms + eps) * norm_w).astype(jnp.bfloat16)

        # ---- in_proj, split into x / res halves (lane-aligned outputs) ----
        xi = jnp.dot(xn, wx_ref[0], preferred_element_type=jnp.float32)   # (rows, d_inner)
        res = jnp.dot(xn, wr_ref[0], preferred_element_type=jnp.float32)  # (rows, d_inner)

        # ---- depthwise causal conv1d: XLU rolls + VPU FMAs (no concat temp) ----
        acc = xi * small[d_conv - 1:d_conv, :]                # tap with shift s = 0
        for k in range(d_conv - 1):                           # taps s = d_conv-1 .. 1
            s = d_conv - 1 - k
            win = pltpu.roll(xi, shift=s, axis=0) * ckeep_ref[:, k:k + 1]
            acc = acc + win * small[k:k + 1, :]
        xc = _silu(acc + small[lay['conv_b']:lay['conv_b'] + 1, :])       # (rows, d_inner)
        xc16 = xc.astype(jnp.bfloat16)

        # ---- fused x_proj (dt | B | C) + dt_proj + softplus ----
        xdbl = jnp.dot(xc16, xprojw_ref[0], preferred_element_type=jnp.float32)
        dlr16 = xdbl[:, :dt_rank].astype(jnp.bfloat16)
        delta = _softplus(jnp.dot(dlr16, dtw_ref[0], preferred_element_type=jnp.float32)
                          + small[lay['dt_b']:lay['dt_b'] + 1, :])        # (rows, d_inner)

        # ---- selective scan (cumsum mode), statically unrolled over d_state ----
        # Per state: only (rows, d_inner) live temporaries; y accumulated on the VPU.
        du = delta * xc
        y = xc * small[lay['d_row']:lay['d_row'] + 1, :]      # D skip term
        tri_s = tri_s_ref[...]                                # strict-upper block-diag (f32)
        tri_i = tri_i_ref[...]                                # inclusive-lower block-diag (f32)
        for i in range(d_state):
            a_i = small[lay['a0'] + i:lay['a0'] + i + 1, :]   # -exp(A_log[:, i]), host-precomputed
            b_col = xdbl[:, dt_rank + i:dt_rank + i + 1]
            c_col = xdbl[:, dt_rank + d_state + i:dt_rank + d_state + i + 1]
            dA_i = delta * a_i
            suffix = jnp.dot(tri_s, dA_i, preferred_element_type=jnp.float32)
            dA_cs = jnp.exp(suffix)
            num = jnp.dot(tri_i, du * b_col * dA_cs, preferred_element_type=jnp.float32)
            # approx reciprocal on the EUP slot (validated finite at these scales)
            h_i = num * pl.reciprocal(dA_cs + 1e-12, approx=True)
            y = y + h_i * c_col

        # ---- gate, out_proj, residual ----
        y16 = (y * _silu(res)).astype(jnp.bfloat16)
        h_scr[...] = jnp.dot(y16, outw_ref[0], preferred_element_type=jnp.float32) + h_prev

        # ---- final RMSNorm + forecast head (lane-dense (1, rows) store) ----
        @pl.when(layer == n_layers - 1)
        def _head():
            hf = h_scr[...]
            ms2 = jnp.mean(hf * hf, axis=-1, keepdims=True)
            hn = (hf * jax.lax.rsqrt(ms2 + eps) * normfw_ref[...]).astype(jnp.bfloat16)
            fc = jax.lax.dot_general(headw_ref[...], hn,
                                     dimension_numbers=(((1,), (1,)), ((), ())),
                                     preferred_element_type=jnp.float32)  # (1, rows)
            o_ref[0] = (fc + headb_ref[...]).astype(o_ref.dtype)

    return kernel


# ----------------------------- model config / params / forward -----------------------------
def make_args(d_model, n_layer, d_state=16, expand=2, d_conv=4):
    return dict(
        d_model=d_model, n_layer=n_layer, d_state=d_state, d_conv=d_conv,
        d_inner=int(expand * d_model), dt_rank=math.ceil(d_model / 16),
    )


def init_params(key, args, input_dim):
    d_model, d_inner = args['d_model'], args['d_inner']
    d_state, dt_rank = args['d_state'], args['dt_rank']
    d_conv, n_layer = args['d_conv'], args['n_layer']

    def nrm(k, shape, scale, dtype=jnp.float32):
        return (scale * jax.random.normal(k, shape, dtype=jnp.float32)).astype(dtype)

    keys = jax.random.split(key, 4 + 8 * n_layer)
    ki = iter(keys)
    p = {}
    # matmul weights stored in bf16 (f32 accumulation inside the kernel)
    p['in_w'] = nrm(next(ki), (input_dim, d_model), 1.0 / math.sqrt(input_dim), jnp.bfloat16)
    p['in_b'] = nrm(next(ki), (1, d_model), 0.02)
    layers = []
    for _ in range(n_layer):
        lp = {}
        lp['norm_w'] = jnp.ones((1, d_model), jnp.float32)
        lp['inx_w'] = nrm(next(ki), (d_model, d_inner), 1.0 / math.sqrt(d_model), jnp.bfloat16)
        lp['inr_w'] = nrm(next(ki), (d_model, d_inner), 1.0 / math.sqrt(d_model), jnp.bfloat16)
        lp['conv_w'] = nrm(next(ki), (d_conv, d_inner), 1.0 / math.sqrt(d_conv))
        lp['conv_b'] = nrm(next(ki), (1, d_inner), 0.02)
        # fused x_proj weight: columns = [dt_rank | d_state (B) | d_state (C)]
        lp['xproj_w'] = nrm(next(ki), (d_inner, dt_rank + 2 * d_state),
                            1.0 / math.sqrt(d_inner), jnp.bfloat16)
        lp['dt_w'] = nrm(next(ki), (dt_rank, d_inner), 0.1, jnp.bfloat16)
        lp['dt_b'] = -2.0 + nrm(next(ki), (1, d_inner), 0.01)
        # host-precomputed -exp(A_log): A_log[d, n] = log(n+1) -> A_neg[n, d] = -(n+1)
        lp['A_neg'] = -jnp.broadcast_to(
            jnp.arange(1, d_state + 1, dtype=jnp.float32)[:, None], (d_state, d_inner))
        lp['D'] = jnp.ones((1, d_inner), jnp.float32)
        lp['out_w'] = nrm(next(ki), (d_inner, d_model), 1.0 / math.sqrt(d_inner), jnp.bfloat16)
        layers.append(lp)
    p['layers'] = layers
    p['normf_w'] = jnp.ones((1, d_model), jnp.float32)
    p['head_w'] = nrm(next(ki), (1, d_model), 1.0 / math.sqrt(d_model), jnp.bfloat16)
    p['head_b'] = nrm(next(ki), (1, 1), 0.02)
    return p


def make_forward(args, out_len):
    d_model, d_inner = args['d_model'], args['d_inner']
    d_state, dt_rank = args['d_state'], args['dt_rank']
    d_conv, n_layer = args['d_conv'], args['n_layer']
    assert d_inner >= d_model, "norm_w packing assumes d_inner >= d_model (expand >= 1)"
    lay = _small_layout(d_conv, d_state)
    kind = _device_kind()
    vmem_limit = _pick_vmem_limit(kind)

    def fwd(params, x):
        B, L, din = x.shape
        bb = _pick_batch_block(B, L, kind)    # batch elements packed per grid step
        rows = bb * L                         # matmul M dimension per step
        nb = B // bb

        # ---- host-precomputed constants (fetched once; constant index maps) ----
        r = jnp.arange(rows)
        seq = r // L
        same = seq[:, None] == seq[None, :]
        lower = r[None, :] <= r[:, None]
        # f32 masks (exact 0/1): the scan-critical triangular matmuls run in f32
        tri_incl = (same & lower).astype(jnp.float32)         # block-diag inclusive lower
        tri_suff = (same & (~lower)).astype(jnp.float32)      # block-diag strict upper
        pos = r % L
        conv_keep = (pos[:, None] >=
                     (d_conv - 1 - jnp.arange(d_conv))[None, :]).astype(jnp.float32)

        # ---- pack per-layer small params into one bundle, stack big weights ----
        def pack_small(lp):
            norm_pad = jnp.pad(lp['norm_w'], ((0, 0), (0, d_inner - d_model)))
            return jnp.concatenate(
                [lp['conv_w'], lp['conv_b'], lp['dt_b'], lp['D'], norm_pad, lp['A_neg']],
                axis=0)                                       # (n_small, d_inner)

        small_s = jnp.stack([pack_small(lp) for lp in params['layers']], axis=0)
        stk = lambda name: jnp.stack([lp[name] for lp in params['layers']], axis=0)
        wx_s, wr_s = stk('inx_w'), stk('inr_w')
        xproj_s, dtw_s, outw_s = stk('xproj_w'), stk('dt_w'), stk('out_w')

        kernel = make_fused_kernel(L=L, bb=bb, d_model=d_model, d_inner=d_inner,
                                   d_state=d_state, dt_rank=dt_rank, d_conv=d_conv)

        x3d = x.reshape(nb, rows, din).astype(jnp.float32)

        def cst(shape):   # constant (layer/batch independent) input
            return pl.BlockSpec(shape, lambda i, l: (0,) * len(shape))

        def lyr(shape):   # per-layer stacked weight
            return pl.BlockSpec((1,) + shape, lambda i, l: (l, 0, 0))

        cp_kwargs = dict(dimension_semantics=("parallel", "arbitrary"))
        if vmem_limit is not None:
            cp_kwargs['vmem_limit_bytes'] = vmem_limit

        out = pl.pallas_call(
            kernel,
            out_shape=jax.ShapeDtypeStruct((nb, 1, rows), jnp.float32),
            grid=(nb, n_layer),
            in_specs=[
                pl.BlockSpec((1, rows, din), lambda i, l: (i, 0, 0)),  # tokens
                cst((din, d_model)),                                   # in_w
                cst((1, d_model)),                                     # in_b
                cst((rows, rows)),                                     # tri_incl
                cst((rows, rows)),                                     # tri_suff
                cst((rows, d_conv)),                                   # conv_keep
                lyr((lay['n_small'], d_inner)),                        # packed small params
                lyr((d_model, d_inner)),                               # in_proj (x half)
                lyr((d_model, d_inner)),                               # in_proj (res half)
                lyr((d_inner, dt_rank + 2 * d_state)),                 # x_proj (dt|B|C)
                lyr((dt_rank, d_inner)),                               # dt_proj w
                lyr((d_inner, d_model)),                               # out_proj
                cst((1, d_model)),                                     # norm_f w
                cst((1, d_model)),                                     # head w
                cst((1, 1)),                                           # head b
            ],
            out_specs=pl.BlockSpec((1, 1, rows), lambda i, l: (i, 0, 0)),
            scratch_shapes=[pltpu.VMEM((rows, d_model), jnp.float32)],  # resident h
            compiler_params=pltpu.CompilerParams(**cp_kwargs),
        )(x3d, params['in_w'], params['in_b'], tri_incl, tri_suff, conv_keep,
          small_s, wx_s, wr_s, xproj_s, dtw_s, outw_s,
          params['normf_w'], params['head_w'], params['head_b'])

        # head was evaluated at every position (lane-dense store); keep the last
        # out_len positions of each sequence on the host.
        out = out.reshape(nb, bb, L)[:, :, L - out_len:]
        return out.reshape(B, out_len, 1)

    return jax.jit(fwd)


if __name__ == "__main__":
    B, L, input_dim = 2, 8, 7
    out_len = 4
    args = make_args(d_model=32, n_layer=2)

    key = jax.random.PRNGKey(0)
    pkey, xkey = jax.random.split(key)
    params = init_params(pkey, args, input_dim)
    x = jax.random.normal(xkey, (B, L, input_dim), dtype=jnp.float32)

    fwd = make_forward(args, out_len)
    out = jax.block_until_ready(fwd(params, x))

    assert out.shape == (B, out_len, 1), out.shape
    assert bool(jnp.all(jnp.isfinite(out)))
    print("KERNEL_OK")
</pallas_src>

<mosaic_0001>
module attributes {stable_mosaic.version = 11 : i64} {
  func.func @kernel(%arg0: i32, %arg1: i32, %arg2: memref<1x16x7xf32, #tpu.memory_space<vmem>>, %arg3: memref<7x32xbf16, #tpu.memory_space<vmem>>, %arg4: memref<1x32xf32, #tpu.memory_space<vmem>>, %arg5: memref<16x16xf32, #tpu.memory_space<vmem>>, %arg6: memref<16x16xf32, #tpu.memory_space<vmem>>, %arg7: memref<16x4xf32, #tpu.memory_space<vmem>>, %arg8: memref<1x24x64xf32, #tpu.memory_space<vmem>>, %arg9: memref<1x32x64xbf16, #tpu.memory_space<vmem>>, %arg10: memref<1x32x64xbf16, #tpu.memory_space<vmem>>, %arg11: memref<1x64x34xbf16, #tpu.memory_space<vmem>>, %arg12: memref<1x2x64xbf16, #tpu.memory_space<vmem>>, %arg13: memref<1x64x32xbf16, #tpu.memory_space<vmem>>, %arg14: memref<1x32xf32, #tpu.memory_space<vmem>>, %arg15: memref<1x32xbf16, #tpu.memory_space<vmem>>, %arg16: memref<1x1xf32, #tpu.memory_space<vmem>>, %arg17: memref<1x1x16xf32, #tpu.memory_space<vmem>>, %arg18: memref<16x32xf32, #tpu.memory_space<vmem>>) attributes {dimension_semantics = [#tpu.dimension_semantics<parallel>, #tpu.dimension_semantics<arbitrary>], iteration_bounds = array<i64: 1, 2>, scalar_prefetch = 0 : i64, scratch_operands = 1 : i64, tpu.core_type = #tpu.core_type<tc>, window_params = [{transform_indices = @transform_0, window_bounds = array<i64: 1, 16, 7>}, {pipeline_mode = #tpu.pipeline_mode<synchronous>, transform_indices = @transform_1, window_bounds = array<i64: 7, 32>}, {pipeline_mode = #tpu.pipeline_mode<synchronous>, transform_indices = @transform_2, window_bounds = array<i64: 1, 32>}, {pipeline_mode = #tpu.pipeline_mode<synchronous>, transform_indices = @transform_3, window_bounds = array<i64: 16, 16>}, {pipeline_mode = #tpu.pipeline_mode<synchronous>, transform_indices = @transform_4, window_bounds = array<i64: 16, 16>}, {pipeline_mode = #tpu.pipeline_mode<synchronous>, transform_indices = @transform_5, window_bounds = array<i64: 16, 4>}, {transform_indices = @transform_6, window_bounds = array<i64: 1, 24, 64>}, {transform_indices = @transform_7, window_bounds = array<i64: 1, 32, 64>}, {transform_indices = @transform_8, window_bounds = array<i64: 1, 32, 64>}, {transform_indices = @transform_9, window_bounds = array<i64: 1, 64, 34>}, {transform_indices = @transform_10, window_bounds = array<i64: 1, 2, 64>}, {transform_indices = @transform_11, window_bounds = array<i64: 1, 64, 32>}, {pipeline_mode = #tpu.pipeline_mode<synchronous>, transform_indices = @transform_12, window_bounds = array<i64: 1, 32>}, {pipeline_mode = #tpu.pipeline_mode<synchronous>, transform_indices = @transform_13, window_bounds = array<i64: 1, 32>}, {pipeline_mode = #tpu.pipeline_mode<synchronous>, transform_indices = @transform_14, window_bounds = array<i64: 1, 1>}, {transform_indices = @transform_15, window_bounds = array<i64: 1, 1, 16>}]} {
    %c0_i32 = arith.constant 0 : i32
    %0 = arith.cmpi eq, %arg1, %c0_i32 : i32
    %1 = arith.extui %0 : i1 to i32
    %c0_i32_0 = arith.constant 0 : i32
    %2 = arith.cmpi ne, %1, %c0_i32_0 : i32
    scf.if %2 {
      %c0_95 = arith.constant 0 : index
      %c0_96 = arith.constant 0 : index
      %c0_97 = arith.constant 0 : index
      %395 = vector.load %arg2[%c0_95, %c0_96, %c0_97] : memref<1x16x7xf32, #tpu.memory_space<vmem>>, vector<1x16x7xf32>
      %396 = vector.shape_cast %395 : vector<1x16x7xf32> to vector<16x7xf32>
      %397 = arith.truncf %396 : vector<16x7xf32> to vector<16x7xbf16>
      %c0_98 = arith.constant 0 : index
      %c0_99 = arith.constant 0 : index
      %398 = vector.load %arg3[%c0_98, %c0_99] : memref<7x32xbf16, #tpu.memory_space<vmem>>, vector<7x32xbf16>
      %cst_100 = arith.constant dense<0.000000e+00> : vector<16x32xf32>
      %399 = tpu.matmul %397, %398, %cst_100 {dimension_numbers = #tpu.dot_dimension_numbers<[1], [0], [0], [1], [0, 0, 1, 1], [], []>} : vector<16x7xbf16>, vector<7x32xbf16>, vector<16x32xf32> -> vector<16x32xf32>
      %c0_101 = arith.constant 0 : index
      %c0_102 = arith.constant 0 : index
      %400 = vector.load %arg4[%c0_101, %c0_102] : memref<1x32xf32, #tpu.memory_space<vmem>>, vector<1x32xf32>
      %401 = vector.broadcast %400 : vector<1x32xf32> to vector<16x32xf32>
      %402 = arith.addf %399, %401 : vector<16x32xf32>
      %c0_103 = arith.constant 0 : index
      %c0_104 = arith.constant 0 : index
      %403 = vector.load %arg18[%c0_103, %c0_104] : memref<16x32xf32, #tpu.memory_space<vmem>>, vector<16x32xf32>
      tpu.vector_store %arg18[%c0_103, %c0_104], %402 {strides = array<i32>} : memref<16x32xf32, #tpu.memory_space<vmem>>, vector<16x32xf32>,
    } else {
    }
    %c0 = arith.constant 0 : index
    %c0_1 = arith.constant 0 : index
    %3 = vector.load %arg18[%c0, %c0_1] : memref<16x32xf32, #tpu.memory_space<vmem>>, vector<16x32xf32>
    %c0_2 = arith.constant 0 : index
    %c0_3 = arith.constant 0 : index
    %c0_4 = arith.constant 0 : index
    %4 = vector.load %arg8[%c0_2, %c0_3, %c0_4] : memref<1x24x64xf32, #tpu.memory_space<vmem>>, vector<1x24x64xf32>
    %5 = vector.shape_cast %4 : vector<1x24x64xf32> to vector<24x64xf32>
    %6 = vector.extract_strided_slice %5 {offsets = [7, 0], sizes = [1, 32], strides = [1, 1]} : vector<24x64xf32> to vector<1x32xf32>
    %7 = arith.mulf %3, %3 : vector<16x32xf32>
    %cst = arith.constant dense<0.000000e+00> : vector<16xf32>
    %8 = vector.multi_reduction <add>, %7, %cst [1] : vector<16x32xf32> to vector<16xf32>
    %9 = vector.shape_cast %8 : vector<16xf32> to vector<16x1xf32>
    %cst_5 = arith.constant 3.200000e+01 : f32
    %10 = vector.broadcast %cst_5 : f32 to vector<16x1xf32>
    %11 = arith.divf %9, %10 : vector<16x1xf32>
    %cst_6 = arith.constant 9.99999974E-6 : f32
    %12 = vector.broadcast %cst_6 : f32 to vector<16x1xf32>
    %13 = arith.addf %11, %12 : vector<16x1xf32>
    %14 = math.rsqrt %13 : vector<16x1xf32>
    %15 = vector.broadcast %14 : vector<16x1xf32> to vector<16x32xf32>
    %16 = arith.mulf %3, %15 : vector<16x32xf32>
    %17 = vector.broadcast %6 : vector<1x32xf32> to vector<16x32xf32>
    %18 = arith.mulf %16, %17 : vector<16x32xf32>
    %19 = arith.truncf %18 : vector<16x32xf32> to vector<16x32xbf16>
    %c0_7 = arith.constant 0 : index
    %c0_8 = arith.constant 0 : index
    %c0_9 = arith.constant 0 : index
    %20 = vector.load %arg9[%c0_7, %c0_8, %c0_9] : memref<1x32x64xbf16, #tpu.memory_space<vmem>>, vector<1x32x64xbf16>
    %21 = vector.shape_cast %20 : vector<1x32x64xbf16> to vector<32x64xbf16>
    %cst_10 = arith.constant dense<0.000000e+00> : vector<16x64xf32>
    %22 = tpu.matmul %19, %21, %cst_10 {dimension_numbers = #tpu.dot_dimension_numbers<[1], [0], [0], [1], [0, 0, 1, 1], [], []>} : vector<16x32xbf16>, vector<32x64xbf16>, vector<16x64xf32> -> vector<16x64xf32>
    %c0_11 = arith.constant 0 : index
    %c0_12 = arith.constant 0 : index
    %c0_13 = arith.constant 0 : index
    %23 = vector.load %arg10[%c0_11, %c0_12, %c0_13] : memref<1x32x64xbf16, #tpu.memory_space<vmem>>, vector<1x32x64xbf16>
    %24 = vector.shape_cast %23 : vector<1x32x64xbf16> to vector<32x64xbf16>
    %cst_14 = arith.constant dense<0.000000e+00> : vector<16x64xf32>
    %25 = tpu.matmul %19, %24, %cst_14 {dimension_numbers = #tpu.dot_dimension_numbers<[1], [0], [0], [1], [0, 0, 1, 1], [], []>} : vector<16x32xbf16>, vector<32x64xbf16>, vector<16x64xf32> -> vector<16x64xf32>
    %26 = vector.extract_strided_slice %5 {offsets = [3, 0], sizes = [1, 64], strides = [1, 1]} : vector<24x64xf32> to vector<1x64xf32>
    %27 = vector.broadcast %26 : vector<1x64xf32> to vector<16x64xf32>
    %28 = arith.mulf %22, %27 : vector<16x64xf32>
    %c3_i32 = arith.constant 3 : i32
    %29 = tpu.dynamic_rotate %22 by %c3_i32 dim 0 : vector<16x64xf32>, i32 -> vector<16x64xf32>
    %c0_15 = arith.constant 0 : index
    %c0_16 = arith.constant 0 : index
    %30 = vector.load %arg7[%c0_15, %c0_16] : memref<16x4xf32, #tpu.memory_space<vmem>>, vector<16x1xf32>
    %31 = vector.broadcast %30 : vector<16x1xf32> to vector<16x64xf32>
    %32 = arith.mulf %29, %31 : vector<16x64xf32>
    %33 = vector.extract_strided_slice %5 {offsets = [0, 0], sizes = [1, 64], strides = [1, 1]} : vector<24x64xf32> to vector<1x64xf32>
    %34 = vector.broadcast %33 : vector<1x64xf32> to vector<16x64xf32>
    %35 = arith.mulf %32, %34 : vector<16x64xf32>
    %36 = arith.addf %28, %35 : vector<16x64xf32>
    %c2_i32 = arith.constant 2 : i32
    %37 = tpu.dynamic_rotate %22 by %c2_i32 dim 0 : vector<16x64xf32>, i32 -> vector<16x64xf32>
    %c0_17 = arith.constant 0 : index
    %c1 = arith.constant 1 : index
    %38 = vector.load %arg7[%c0_17, %c1] : memref<16x4xf32, #tpu.memory_space<vmem>>, vector<16x1xf32>
    %39 = vector.broadcast %38 : vector<16x1xf32> to vector<16x64xf32>
    %40 = arith.mulf %37, %39 : vector<16x64xf32>
    %41 = vector.extract_strided_slice %5 {offsets = [1, 0], sizes = [1, 64], strides = [1, 1]} : vector<24x64xf32> to vector<1x64xf32>
    %42 = vector.broadcast %41 : vector<1x64xf32> to vector<16x64xf32>
    %43 = arith.mulf %40, %42 : vector<16x64xf32>
    %44 = arith.addf %36, %43 : vector<16x64xf32>
    %c1_i32 = arith.constant 1 : i32
    %45 = tpu.dynamic_rotate %22 by %c1_i32 dim 0 : vector<16x64xf32>, i32 -> vector<16x64xf32>
    %c0_18 = arith.constant 0 : index
    %c2 = arith.constant 2 : index
    %46 = vector.load %arg7[%c0_18, %c2] : memref<16x4xf32, #tpu.memory_space<vmem>>, vector<16x1xf32>
    %47 = vector.broadcast %46 : vector<16x1xf32> to vector<16x64xf32>
    %48 = arith.mulf %45, %47 : vector<16x64xf32>
    %49 = vector.extract_strided_slice %5 {offsets = [2, 0], sizes = [1, 64], strides = [1, 1]} : vector<24x64xf32> to vector<1x64xf32>
    %50 = vector.broadcast %49 : vector<1x64xf32> to vector<16x64xf32>
    %51 = arith.mulf %48, %50 : vector<16x64xf32>
    %52 = arith.addf %44, %51 : vector<16x64xf32>
    %53 = vector.extract_strided_slice %5 {offsets = [4, 0], sizes = [1, 64], strides = [1, 1]} : vector<24x64xf32> to vector<1x64xf32>
    %54 = vector.broadcast %53 : vector<1x64xf32> to vector<16x64xf32>
    %55 = arith.addf %52, %54 : vector<16x64xf32>
    %cst_19 = arith.constant 0.000000e+00 : f32
    %56 = vector.broadcast %cst_19 : f32 to vector<16x64xf32>
    %57 = arith.subf %56, %55 : vector<16x64xf32>
    %58 = math.exp %57 : vector<16x64xf32>
    %cst_20 = arith.constant 1.000000e+00 : f32
    %59 = vector.broadcast %cst_20 : f32 to vector<16x64xf32>
    %60 = arith.addf %59, %58 : vector<16x64xf32>
    %cst_21 = arith.constant 1.000000e+00 : f32
    %61 = vector.broadcast %cst_21 : f32 to vector<16x64xf32>
    %62 = arith.divf %61, %60 : vector<16x64xf32>
    %63 = arith.mulf %55, %62 : vector<16x64xf32>
    %64 = arith.truncf %63 : vector<16x64xf32> to vector<16x64xbf16>
    %c0_22 = arith.constant 0 : index
    %c0_23 = arith.constant 0 : index
    %c0_24 = arith.constant 0 : index
    %65 = vector.load %arg11[%c0_22, %c0_23, %c0_24] : memref<1x64x34xbf16, #tpu.memory_space<vmem>>, vector<1x64x34xbf16>
    %66 = vector.shape_cast %65 : vector<1x64x34xbf16> to vector<64x34xbf16>
    %cst_25 = arith.constant dense<0.000000e+00> : vector<16x34xf32>
    %67 = tpu.matmul %64, %66, %cst_25 {dimension_numbers = #tpu.dot_dimension_numbers<[1], [0], [0], [1], [0, 0, 1, 1], [], []>} : vector<16x64xbf16>, vector<64x34xbf16>, vector<16x34xf32> -> vector<16x34xf32>
    %68 = vector.extract_strided_slice %67 {offsets = [0, 0], sizes = [16, 2], strides = [1, 1]} : vector<16x34xf32> to vector<16x2xf32>
    %69 = arith.truncf %68 : vector<16x2xf32> to vector<16x2xbf16>
    %c0_26 = arith.constant 0 : index
    %c0_27 = arith.constant 0 : index
    %c0_28 = arith.constant 0 : index
    %70 = vector.load %arg12[%c0_26, %c0_27, %c0_28] : memref<1x2x64xbf16, #tpu.memory_space<vmem>>, vector<1x2x64xbf16>
    %71 = vector.shape_cast %70 : vector<1x2x64xbf16> to vector<2x64xbf16>
    %cst_29 = arith.constant dense<0.000000e+00> : vector<16x64xf32>
    %72 = tpu.matmul %69, %71, %cst_29 {dimension_numbers = #tpu.dot_dimension_numbers<[1], [0], [0], [1], [0, 0, 1, 1], [], []>} : vector<16x2xbf16>, vector<2x64xbf16>, vector<16x64xf32> -> vector<16x64xf32>
    %73 = vector.extract_strided_slice %5 {offsets = [5, 0], sizes = [1, 64], strides = [1, 1]} : vector<24x64xf32> to vector<1x64xf32>
    %74 = vector.broadcast %73 : vector<1x64xf32> to vector<16x64xf32>
    %75 = arith.addf %72, %74 : vector<16x64xf32>
    %cst_30 = arith.constant 2.000000e+01 : f32
    %76 = vector.broadcast %cst_30 : f32 to vector<16x64xf32>
    %77 = arith.cmpf ogt, %75, %76 : vector<16x64xf32>
    %78 = math.exp %75 : vector<16x64xf32>
    %cst_31 = arith.constant 1.000000e+00 : f32
    %79 = vector.broadcast %cst_31 : f32 to vector<16x64xf32>
    %80 = arith.addf %79, %78 : vector<16x64xf32>
    %81 = math.log %80 : vector<16x64xf32>
    %82 = arith.select %77, %75, %81 : vector<16x64xi1>, vector<16x64xf32>
    %83 = arith.mulf %82, %63 : vector<16x64xf32>
    %84 = vector.extract_strided_slice %5 {offsets = [6, 0], sizes = [1, 64], strides = [1, 1]} : vector<24x64xf32> to vector<1x64xf32>
    %85 = vector.broadcast %84 : vector<1x64xf32> to vector<16x64xf32>
    %86 = arith.mulf %63, %85 : vector<16x64xf32>
    %c0_32 = arith.constant 0 : index
    %c0_33 = arith.constant 0 : index
    %87 = vector.load %arg6[%c0_32, %c0_33] : memref<16x16xf32, #tpu.memory_space<vmem>>, vector<16x16xf32>
    %c0_34 = arith.constant 0 : index
    %c0_35 = arith.constant 0 : index
    %88 = vector.load %arg5[%c0_34, %c0_35] : memref<16x16xf32, #tpu.memory_space<vmem>>, vector<16x16xf32>
    %89 = vector.extract_strided_slice %5 {offsets = [8, 0], sizes = [1, 64], strides = [1, 1]} : vector<24x64xf32> to vector<1x64xf32>
    %90 = vector.extract_strided_slice %67 {offsets = [0, 2], sizes = [16, 1], strides = [1, 1]} : vector<16x34xf32> to vector<16x1xf32>
    %91 = vector.extract_strided_slice %67 {offsets = [0, 18], sizes = [16, 1], strides = [1, 1]} : vector<16x34xf32> to vector<16x1xf32>
    %92 = vector.broadcast %89 : vector<1x64xf32> to vector<16x64xf32>
    %93 = arith.mulf %82, %92 : vector<16x64xf32>
    %cst_36 = arith.constant dense<0.000000e+00> : vector<16x64xf32>
    %94 = tpu.matmul %87, %93, %cst_36 {dimension_numbers = #tpu.dot_dimension_numbers<[1], [0], [0], [1], [0, 0, 1, 1], [], []>} : vector<16x16xf32>, vector<16x64xf32>, vector<16x64xf32> -> vector<16x64xf32>
    %95 = math.exp %94 : vector<16x64xf32>
    %96 = vector.broadcast %90 : vector<16x1xf32> to vector<16x64xf32>
    %97 = arith.mulf %83, %96 : vector<16x64xf32>
    %98 = arith.mulf %97, %95 : vector<16x64xf32>
    %cst_37 = arith.constant dense<0.000000e+00> : vector<16x64xf32>
    %99 = tpu.matmul %88, %98, %cst_37 {dimension_numbers = #tpu.dot_dimension_numbers<[1], [0], [0], [1], [0, 0, 1, 1], [], []>} : vector<16x16xf32>, vector<16x64xf32>, vector<16x64xf32> -> vector<16x64xf32>
    %cst_38 = arith.constant 9.99999996E-13 : f32
    %100 = vector.broadcast %cst_38 : f32 to vector<16x64xf32>
    %101 = arith.addf %95, %100 : vector<16x64xf32>
    %102 = tpu.reciprocal %101 {approx = true} : vector<16x64xf32> -> vector<16x64xf32>
    %103 = arith.mulf %99, %102 : vector<16x64xf32>
    %104 = vector.broadcast %91 : vector<16x1xf32> to vector<16x64xf32>
    %105 = arith.mulf %103, %104 : vector<16x64xf32>
    %106 = arith.addf %86, %105 : vector<16x64xf32>
    %107 = vector.extract_strided_slice %5 {offsets = [9, 0], sizes = [1, 64], strides = [1, 1]} : vector<24x64xf32> to vector<1x64xf32>
    %108 = vector.extract_strided_slice %67 {offsets = [0, 3], sizes = [16, 1], strides = [1, 1]} : vector<16x34xf32> to vector<16x1xf32>
    %109 = vector.extract_strided_slice %67 {offsets = [0, 19], sizes = [16, 1], strides = [1, 1]} : vector<16x34xf32> to vector<16x1xf32>
    %110 = vector.broadcast %107 : vector<1x64xf32> to vector<16x64xf32>
    %111 = arith.mulf %82, %110 : vector<16x64xf32>
    %cst_39 = arith.constant dense<0.000000e+00> : vector<16x64xf32>
    %112 = tpu.matmul %87, %111, %cst_39 {dimension_numbers = #tpu.dot_dimension_numbers<[1], [0], [0], [1], [0, 0, 1, 1], [], []>} : vector<16x16xf32>, vector<16x64xf32>, vector<16x64xf32> -> vector<16x64xf32>
    %113 = math.exp %112 : vector<16x64xf32>
    %114 = vector.broadcast %108 : vector<16x1xf32> to vector<16x64xf32>
    %115 = arith.mulf %83, %114 : vector<16x64xf32>
    %116 = arith.mulf %115, %113 : vector<16x64xf32>
    %cst_40 = arith.constant dense<0.000000e+00> : vector<16x64xf32>
    %117 = tpu.matmul %88, %116, %cst_40 {dimension_numbers = #tpu.dot_dimension_numbers<[1], [0], [0], [1], [0, 0, 1, 1], [], []>} : vector<16x16xf32>, vector<16x64xf32>, vector<16x64xf32> -> vector<16x64xf32>
    %cst_41 = arith.constant 9.99999996E-13 : f32
    %118 = vector.broadcast %cst_41 : f32 to vector<16x64xf32>
    %119 = arith.addf %113, %118 : vector<16x64xf32>
    %120 = tpu.reciprocal %119 {approx = true} : vector<16x64xf32> -> vector<16x64xf32>
    %121 = arith.mulf %117, %120 : vector<16x64xf32>
    %122 = vector.broadcast %109 : vector<16x1xf32> to vector<16x64xf32>
    %123 = arith.mulf %121, %122 : vector<16x64xf32>
    %124 = arith.addf %106, %123 : vector<16x64xf32>
    %125 = vector.extract_strided_slice %5 {offsets = [10, 0], sizes = [1, 64], strides = [1, 1]} : vector<24x64xf32> to vector<1x64xf32>
    %126 = vector.extract_strided_slice %67 {offsets = [0, 4], sizes = [16, 1], strides = [1, 1]} : vector<16x34xf32> to vector<16x1xf32>
    %127 = vector.extract_strided_slice %67 {offsets = [0, 20], sizes = [16, 1], strides = [1, 1]} : vector<16x34xf32> to vector<16x1xf32>
    %128 = vector.broadcast %125 : vector<1x64xf32> to vector<16x64xf32>
    %129 = arith.mulf %82, %128 : vector<16x64xf32>
    %cst_42 = arith.constant dense<0.000000e+00> : vector<16x64xf32>
    %130 = tpu.matmul %87, %129, %cst_42 {dimension_numbers = #tpu.dot_dimension_numbers<[1], [0], [0], [1], [0, 0, 1, 1], [], []>} : vector<16x16xf32>, vector<16x64xf32>, vector<16x64xf32> -> vector<16x64xf32>
    %131 = math.exp %130 : vector<16x64xf32>
    %132 = vector.broadcast %126 : vector<16x1xf32> to vector<16x64xf32>
    %133 = arith.mulf %83, %132 : vector<16x64xf32>
    %134 = arith.mulf %133, %131 : vector<16x64xf32>
    %cst_43 = arith.constant dense<0.000000e+00> : vector<16x64xf32>
    %135 = tpu.matmul %88, %134, %cst_43 {dimension_numbers = #tpu.dot_dimension_numbers<[1], [0], [0], [1], [0, 0, 1, 1], [], []>} : vector<16x16xf32>, vector<16x64xf32>, vector<16x64xf32> -> vector<16x64xf32>
    %cst_44 = arith.constant 9.99999996E-13 : f32
    %136 = vector.broadcast %cst_44 : f32 to vector<16x64xf32>
    %137 = arith.addf %131, %136 : vector<16x64xf32>
    %138 = tpu.reciprocal %137 {approx = true} : vector<16x64xf32> -> vector<16x64xf32>
    %139 = arith.mulf %135, %138 : vector<16x64xf32>
    %140 = vector.broadcast %127 : vector<16x1xf32> to vector<16x64xf32>
    %141 = arith.mulf %139, %140 : vector<16x64xf32>
    %142 = arith.addf %124, %141 : vector<16x64xf32>
    %143 = vector.extract_strided_slice %5 {offsets = [11, 0], sizes = [1, 64], strides = [1, 1]} : vector<24x64xf32> to vector<1x64xf32>
    %144 = vector.extract_strided_slice %67 {offsets = [0, 5], sizes = [16, 1], strides = [1, 1]} : vector<16x34xf32> to vector<16x1xf32>
    %145 = vector.extract_strided_slice %67 {offsets = [0, 21], sizes = [16, 1], strides = [1, 1]} : vector<16x34xf32> to vector<16x1xf32>
    %146 = vector.broadcast %143 : vector<1x64xf32> to vector<16x64xf32>
    %147 = arith.mulf %82, %146 : vector<16x64xf32>
    %cst_45 = arith.constant dense<0.000000e+00> : vector<16x64xf32>
    %148 = tpu.matmul %87, %147, %cst_45 {dimension_numbers = #tpu.dot_dimension_numbers<[1], [0], [0], [1], [0, 0, 1, 1], [], []>} : vector<16x16xf32>, vector<16x64xf32>, vector<16x64xf32> -> vector<16x64xf32>
    %149 = math.exp %148 : vector<16x64xf32>
    %150 = vector.broadcast %144 : vector<16x1xf32> to vector<16x64xf32>
    %151 = arith.mulf %83, %150 : vector<16x64xf32>
    %152 = arith.mulf %151, %149 : vector<16x64xf32>
    %cst_46 = arith.constant dense<0.000000e+00> : vector<16x64xf32>
    %153 = tpu.matmul %88, %152, %cst_46 {dimension_numbers = #tpu.dot_dimension_numbers<[1], [0], [0], [1], [0, 0, 1, 1], [], []>} : vector<16x16xf32>, vector<16x64xf32>, vector<16x64xf32> -> vector<16x64xf32>
    %cst_47 = arith.constant 9.99999996E-13 : f32
    %154 = vector.broadcast %cst_47 : f32 to vector<16x64xf32>
    %155 = arith.addf %149, %154 : vector<16x64xf32>
    %156 = tpu.reciprocal %155 {approx = true} : vector<16x64xf32> -> vector<16x64xf32>
    %157 = arith.mulf %153, %156 : vector<16x64xf32>
    %158 = vector.broadcast %145 : vector<16x1xf32> to vector<16x64xf32>
    %159 = arith.mulf %157, %158 : vector<16x64xf32>
    %160 = arith.addf %142, %159 : vector<16x64xf32>
    %161 = vector.extract_strided_slice %5 {offsets = [12, 0], sizes = [1, 64], strides = [1, 1]} : vector<24x64xf32> to vector<1x64xf32>
    %162 = vector.extract_strided_slice %67 {offsets = [0, 6], sizes = [16, 1], strides = [1, 1]} : vector<16x34xf32> to vector<16x1xf32>
    %163 = vector.extract_strided_slice %67 {offsets = [0, 22], sizes = [16, 1], strides = [1, 1]} : vector<16x34xf32> to vector<16x1xf32>
    %164 = vector.broadcast %161 : vector<1x64xf32> to vector<16x64xf32>
    %165 = arith.mulf %82, %164 : vector<16x64xf32>
    %cst_48 = arith.constant dense<0.000000e+00> : vector<16x64xf32>
    %166 = tpu.matmul %87, %165, %cst_48 {dimension_numbers = #tpu.dot_dimension_numbers<[1], [0], [0], [1], [0, 0, 1, 1], [], []>} : vector<16x16xf32>, vector<16x64xf32>, vector<16x64xf32> -> vector<16x64xf32>
    %167 = math.exp %166 : vector<16x64xf32>
    %168 = vector.broadcast %162 : vector<16x1xf32> to vector<16x64xf32>
    %169 = arith.mulf %83, %168 : vector<16x64xf32>
    %170 = arith.mulf %169, %167 : vector<16x64xf32>
    %cst_49 = arith.constant dense<0.000000e+00> : vector<16x64xf32>
    %171 = tpu.matmul %88, %170, %cst_49 {dimension_numbers = #tpu.dot_dimension_numbers<[1], [0], [0], [1], [0, 0, 1, 1], [], []>} : vector<16x16xf32>, vector<16x64xf32>, vector<16x64xf32> -> vector<16x64xf32>
    %cst_50 = arith.constant 9.99999996E-13 : f32
    %172 = vector.broadcast %cst_50 : f32 to vector<16x64xf32>
    %173 = arith.addf %167, %172 : vector<16x64xf32>
    %174 = tpu.reciprocal %173 {approx = true} : vector<16x64xf32> -> vector<16x64xf32>
    %175 = arith.mulf %171, %174 : vector<16x64xf32>
    %176 = vector.broadcast %163 : vector<16x1xf32> to vector<16x64xf32>
    %177 = arith.mulf %175, %176 : vector<16x64xf32>
    %178 = arith.addf %160, %177 : vector<16x64xf32>
    %179 = vector.extract_strided_slice %5 {offsets = [13, 0], sizes = [1, 64], strides = [1, 1]} : vector<24x64xf32> to vector<1x64xf32>
    %180 = vector.extract_strided_slice %67 {offsets = [0, 7], sizes = [16, 1], strides = [1, 1]} : vector<16x34xf32> to vector<16x1xf32>
    %181 = vector.extract_strided_slice %67 {offsets = [0, 23], sizes = [16, 1], strides = [1, 1]} : vector<16x34xf32> to vector<16x1xf32>
    %182 = vector.broadcast %179 : vector<1x64xf32> to vector<16x64xf32>
    %183 = arith.mulf %82, %182 : vector<16x64xf32>
    %cst_51 = arith.constant dense<0.000000e+00> : vector<16x64xf32>
    %184 = tpu.matmul %87, %183, %cst_51 {dimension_numbers = #tpu.dot_dimension_numbers<[1], [0], [0], [1], [0, 0, 1, 1], [], []>} : vector<16x16xf32>, vector<16x64xf32>, vector<16x64xf32> -> vector<16x64xf32>
    %185 = math.exp %184 : vector<16x64xf32>
    %186 = vector.broadcast %180 : vector<16x1xf32> to vector<16x64xf32>
    %187 = arith.mulf %83, %186 : vector<16x64xf32>
    %188 = arith.mulf %187, %185 : vector<16x64xf32>
    %cst_52 = arith.constant dense<0.000000e+00> : vector<16x64xf32>
    %189 = tpu.matmul %88, %188, %cst_52 {dimension_numbers = #tpu.dot_dimension_numbers<[1], [0], [0], [1], [0, 0, 1, 1], [], []>} : vector<16x16xf32>, vector<16x64xf32>, vector<16x64xf32> -> vector<16x64xf32>
    %cst_53 = arith.constant 9.99999996E-13 : f32
    %190 = vector.broadcast %cst_53 : f32 to vector<16x64xf32>
    %191 = arith.addf %185, %190 : vector<16x64xf32>
    %192 = tpu.reciprocal %191 {approx = true} : vector<16x64xf32> -> vector<16x64xf32>
    %193 = arith.mulf %189, %192 : vector<16x64xf32>
    %194 = vector.broadcast %181 : vector<16x1xf32> to vector<16x64xf32>
    %195 = arith.mulf %193, %194 : vector<16x64xf32>
    %196 = arith.addf %178, %195 : vector<16x64xf32>
    %197 = vector.extract_strided_slice %5 {offsets = [14, 0], sizes = [1, 64], strides = [1, 1]} : vector<24x64xf32> to vector<1x64xf32>
    %198 = vector.extract_strided_slice %67 {offsets = [0, 8], sizes = [16, 1], strides = [1, 1]} : vector<16x34xf32> to vector<16x1xf32>
    %199 = vector.extract_strided_slice %67 {offsets = [0, 24], sizes = [16, 1], strides = [1, 1]} : vector<16x34xf32> to vector<16x1xf32>
    %200 = vector.broadcast %197 : vector<1x64xf32> to vector<16x64xf32>
    %201 = arith.mulf %82, %200 : vector<16x64xf32>
    %cst_54 = arith.constant dense<0.000000e+00> : vector<16x64xf32>
    %202 = tpu.matmul %87, %201, %cst_54 {dimension_numbers = #tpu.dot_dimension_numbers<[1], [0], [0], [1], [0, 0, 1, 1], [], []>} : vector<16x16xf32>, vector<16x64xf32>, vector<16x64xf32> -> vector<16x64xf32>
    %203 = math.exp %202 : vector<16x64xf32>
    %204 = vector.broadcast %198 : vector<16x1xf32> to vector<16x64xf32>
    %205 = arith.mulf %83, %204 : vector<16x64xf32>
    %206 = arith.mulf %205, %203 : vector<16x64xf32>
    %cst_55 = arith.constant dense<0.000000e+00> : vector<16x64xf32>
    %207 = tpu.matmul %88, %206, %cst_55 {dimension_numbers = #tpu.dot_dimension_numbers<[1], [0], [0], [1], [0, 0, 1, 1], [], []>} : vector<16x16xf32>, vector<16x64xf32>, vector<16x64xf32> -> vector<16x64xf32>
    %cst_56 = arith.constant 9.99999996E-13 : f32
    %208 = vector.broadcast %cst_56 : f32 to vector<16x64xf32>
    %209 = arith.addf %203, %208 : vector<16x64xf32>
    %210 = tpu.reciprocal %209 {approx = true} : vector<16x64xf32> -> vector<16x64xf32>
    %211 = arith.mulf %207, %210 : vector<16x64xf32>
    %212 = vector.broadcast %199 : vector<16x1xf32> to vector<16x64xf32>
    %213 = arith.mulf %211, %212 : vector<16x64xf32>
    %214 = arith.addf %196, %213 : vector<16x64xf32>
    %215 = vector.extract_strided_slice %5 {offsets = [15, 0], sizes = [1, 64], strides = [1, 1]} : vector<24x64xf32> to vector<1x64xf32>
    %216 = vector.extract_strided_slice %67 {offsets = [0, 9], sizes = [16, 1], strides = [1, 1]} : vector<16x34xf32> to vector<16x1xf32>
    %217 = vector.extract_strided_slice %67 {offsets = [0, 25], sizes = [16, 1], strides = [1, 1]} : vector<16x34xf32> to vector<16x1xf32>
    %218 = vector.broadcast %215 : vector<1x64xf32> to vector<16x64xf32>
    %219 = arith.mulf %82, %218 : vector<16x64xf32>
    %cst_57 = arith.constant dense<0.000000e+00> : vector<16x64xf32>
    %220 = tpu.matmul %87, %219, %cst_57 {dimension_numbers = #tpu.dot_dimension_numbers<[1], [0], [0], [1], [0, 0, 1, 1], [], []>} : vector<16x16xf32>, vector<16x64xf32>, vector<16x64xf32> -> vector<16x64xf32>
    %221 = math.exp %220 : vector<16x64xf32>
    %222 = vector.broadcast %216 : vector<16x1xf32> to vector<16x64xf32>
    %223 = arith.mulf %83, %222 : vector<16x64xf32>
    %224 = arith.mulf %223, %221 : vector<16x64xf32>
    %cst_58 = arith.constant dense<0.000000e+00> : vector<16x64xf32>
    %225 = tpu.matmul %88, %224, %cst_58 {dimension_numbers = #tpu.dot_dimension_numbers<[1], [0], [0], [1], [0, 0, 1, 1], [], []>} : vector<16x16xf32>, vector<16x64xf32>, vector<16x64xf32> -> vector<16x64xf32>
    %cst_59 = arith.constant 9.99999996E-13 : f32
    %226 = vector.broadcast %cst_59 : f32 to vector<16x64xf32>
    %227 = arith.addf %221, %226 : vector<16x64xf32>
    %228 = tpu.reciprocal %227 {approx = true} : vector<16x64xf32> -> vector<16x64xf32>
    %229 = arith.mulf %225, %228 : vector<16x64xf32>
    %230 = vector.broadcast %217 : vector<16x1xf32> to vector<16x64xf32>
    %231 = arith.mulf %229, %230 : vector<16x64xf32>
    %232 = arith.addf %214, %231 : vector<16x64xf32>
    %233 = vector.extract_strided_slice %5 {offsets = [16, 0], sizes = [1, 64], strides = [1, 1]} : vector<24x64xf32> to vector<1x64xf32>
    %234 = vector.extract_strided_slice %67 {offsets = [0, 10], sizes = [16, 1], strides = [1, 1]} : vector<16x34xf32> to vector<16x1xf32>
    %235 = vector.extract_strided_slice %67 {offsets = [0, 26], sizes = [16, 1], strides = [1, 1]} : vector<16x34xf32> to vector<16x1xf32>
    %236 = vector.broadcast %233 : vector<1x64xf32> to vector<16x64xf32>
    %237 = arith.mulf %82, %236 : vector<16x64xf32>
    %cst_60 = arith.constant dense<0.000000e+00> : vector<16x64xf32>
    %238 = tpu.matmul %87, %237, %cst_60 {dimension_numbers = #tpu.dot_dimension_numbers<[1], [0], [0], [1], [0, 0, 1, 1], [], []>} : vector<16x16xf32>, vector<16x64xf32>, vector<16x64xf32> -> vector<16x64xf32>
    %239 = math.exp %238 : vector<16x64xf32>
    %240 = vector.broadcast %234 : vector<16x1xf32> to vector<16x64xf32>
    %241 = arith.mulf %83, %240 : vector<16x64xf32>
    %242 = arith.mulf %241, %239 : vector<16x64xf32>
    %cst_61 = arith.constant dense<0.000000e+00> : vector<16x64xf32>
    %243 = tpu.matmul %88, %242, %cst_61 {dimension_numbers = #tpu.dot_dimension_numbers<[1], [0], [0], [1], [0, 0, 1, 1], [], []>} : vector<16x16xf32>, vector<16x64xf32>, vector<16x64xf32> -> vector<16x64xf32>
    %cst_62 = arith.constant 9.99999996E-13 : f32
    %244 = vector.broadcast %cst_62 : f32 to vector<16x64xf32>
    %245 = arith.addf %239, %244 : vector<16x64xf32>
    %246 = tpu.reciprocal %245 {approx = true} : vector<16x64xf32> -> vector<16x64xf32>
    %247 = arith.mulf %243, %246 : vector<16x64xf32>
    %248 = vector.broadcast %235 : vector<16x1xf32> to vector<16x64xf32>
    %249 = arith.mulf %247, %248 : vector<16x64xf32>
    %250 = arith.addf %232, %249 : vector<16x64xf32>
    %251 = vector.extract_strided_slice %5 {offsets = [17, 0], sizes = [1, 64], strides = [1, 1]} : vector<24x64xf32> to vector<1x64xf32>
    %252 = vector.extract_strided_slice %67 {offsets = [0, 11], sizes = [16, 1], strides = [1, 1]} : vector<16x34xf32> to vector<16x1xf32>
    %253 = vector.extract_strided_slice %67 {offsets = [0, 27], sizes = [16, 1], strides = [1, 1]} : vector<16x34xf32> to vector<16x1xf32>
    %254 = vector.broadcast %251 : vector<1x64xf32> to vector<16x64xf32>
    %255 = arith.mulf %82, %254 : vector<16x64xf32>
    %cst_63 = arith.constant dense<0.000000e+00> : vector<16x64xf32>
    %256 = tpu.matmul %87, %255, %cst_63 {dimension_numbers = #tpu.dot_dimension_numbers<[1], [0], [0], [1], [0, 0, 1, 1], [], []>} : vector<16x16xf32>, vector<16x64xf32>, vector<16x64xf32> -> vector<16x64xf32>
    %257 = math.exp %256 : vector<16x64xf32>
    %258 = vector.broadcast %252 : vector<16x1xf32> to vector<16x64xf32>
    %259 = arith.mulf %83, %258 : vector<16x64xf32>
    %260 = arith.mulf %259, %257 : vector<16x64xf32>
    %cst_64 = arith.constant dense<0.000000e+00> : vector<16x64xf32>
    %261 = tpu.matmul %88, %260, %cst_64 {dimension_numbers = #tpu.dot_dimension_numbers<[1], [0], [0], [1], [0, 0, 1, 1], [], []>} : vector<16x16xf32>, vector<16x64xf32>, vector<16x64xf32> -> vector<16x64xf32>
    %cst_65 = arith.constant 9.99999996E-13 : f32
    %262 = vector.broadcast %cst_65 : f32 to vector<16x64xf32>
    %263 = arith.addf %257, %262 : vector<16x64xf32>
    %264 = tpu.reciprocal %263 {approx = true} : vector<16x64xf32> -> vector<16x64xf32>
    %265 = arith.mulf %261, %264 : vector<16x64xf32>
    %266 = vector.broadcast %253 : vector<16x1xf32> to vector<16x64xf32>
    %267 = arith.mulf %265, %266 : vector<16x64xf32>
    %268 = arith.addf %250, %267 : vector<16x64xf32>
    %269 = vector.extract_strided_slice %5 {offsets = [18, 0], sizes = [1, 64], strides = [1, 1]} : vector<24x64xf32> to vector<1x64xf32>
    %270 = vector.extract_strided_slice %67 {offsets = [0, 12], sizes = [16, 1], strides = [1, 1]} : vector<16x34xf32> to vector<16x1xf32>
    %271 = vector.extract_strided_slice %67 {offsets = [0, 28], sizes = [16, 1], strides = [1, 1]} : vector<16x34xf32> to vector<16x1xf32>
    %272 = vector.broadcast %269 : vector<1x64xf32> to vector<16x64xf32>
    %273 = arith.mulf %82, %272 : vector<16x64xf32>
    %cst_66 = arith.constant dense<0.000000e+00> : vector<16x64xf32>
    %274 = tpu.matmul %87, %273, %cst_66 {dimension_numbers = #tpu.dot_dimension_numbers<[1], [0], [0], [1], [0, 0, 1, 1], [], []>} : vector<16x16xf32>, vector<16x64xf32>, vector<16x64xf32> -> vector<16x64xf32>
    %275 = math.exp %274 : vector<16x64xf32>
    %276 = vector.broadcast %270 : vector<16x1xf32> to vector<16x64xf32>
    %277 = arith.mulf %83, %276 : vector<16x64xf32>
    %278 = arith.mulf %277, %275 : vector<16x64xf32>
    %cst_67 = arith.constant dense<0.000000e+00> : vector<16x64xf32>
    %279 = tpu.matmul %88, %278, %cst_67 {dimension_numbers = #tpu.dot_dimension_numbers<[1], [0], [0], [1], [0, 0, 1, 1], [], []>} : vector<16x16xf32>, vector<16x64xf32>, vector<16x64xf32> -> vector<16x64xf32>
    %cst_68 = arith.constant 9.99999996E-13 : f32
    %280 = vector.broadcast %cst_68 : f32 to vector<16x64xf32>
    %281 = arith.addf %275, %280 : vector<16x64xf32>
    %282 = tpu.reciprocal %281 {approx = true} : vector<16x64xf32> -> vector<16x64xf32>
    %283 = arith.mulf %279, %282 : vector<16x64xf32>
    %284 = vector.broadcast %271 : vector<16x1xf32> to vector<16x64xf32>
    %285 = arith.mulf %283, %284 : vector<16x64xf32>
    %286 = arith.addf %268, %285 : vector<16x64xf32>
    %287 = vector.extract_strided_slice %5 {offsets = [19, 0], sizes = [1, 64], strides = [1, 1]} : vector<24x64xf32> to vector<1x64xf32>
    %288 = vector.extract_strided_slice %67 {offsets = [0, 13], sizes = [16, 1], strides = [1, 1]} : vector<16x34xf32> to vector<16x1xf32>
    %289 = vector.extract_strided_slice %67 {offsets = [0, 29], sizes = [16, 1], strides = [1, 1]} : vector<16x34xf32> to vector<16x1xf32>
    %290 = vector.broadcast %287 : vector<1x64xf32> to vector<16x64xf32>
    %291 = arith.mulf %82, %290 : vector<16x64xf32>
    %cst_69 = arith.constant dense<0.000000e+00> : vector<16x64xf32>
    %292 = tpu.matmul %87, %291, %cst_69 {dimension_numbers = #tpu.dot_dimension_numbers<[1], [0], [0], [1], [0, 0, 1, 1], [], []>} : vector<16x16xf32>, vector<16x64xf32>, vector<16x64xf32> -> vector<16x64xf32>
    %293 = math.exp %292 : vector<16x64xf32>
    %294 = vector.broadcast %288 : vector<16x1xf32> to vector<16x64xf32>
    %295 = arith.mulf %83, %294 : vector<16x64xf32>
    %296 = arith.mulf %295, %293 : vector<16x64xf32>
    %cst_70 = arith.constant dense<0.000000e+00> : vector<16x64xf32>
    %297 = tpu.matmul %88, %296, %cst_70 {dimension_numbers = #tpu.dot_dimension_numbers<[1], [0], [0], [1], [0, 0, 1, 1], [], []>} : vector<16x16xf32>, vector<16x64xf32>, vector<16x64xf32> -> vector<16x64xf32>
    %cst_71 = arith.constant 9.99999996E-13 : f32
    %298 = vector.broadcast %cst_71 : f32 to vector<16x64xf32>
    %299 = arith.addf %293, %298 : vector<16x64xf32>
    %300 = tpu.reciprocal %299 {approx = true} : vector<16x64xf32> -> vector<16x64xf32>
    %301 = arith.mulf %297, %300 : vector<16x64xf32>
    %302 = vector.broadcast %289 : vector<16x1xf32> to vector<16x64xf32>
    %303 = arith.mulf %301, %302 : vector<16x64xf32>
    %304 = arith.addf %286, %303 : vector<16x64xf32>
    %305 = vector.extract_strided_slice %5 {offsets = [20, 0], sizes = [1, 64], strides = [1, 1]} : vector<24x64xf32> to vector<1x64xf32>
    %306 = vector.extract_strided_slice %67 {offsets = [0, 14], sizes = [16, 1], strides = [1, 1]} : vector<16x34xf32> to vector<16x1xf32>
    %307 = vector.extract_strided_slice %67 {offsets = [0, 30], sizes = [16, 1], strides = [1, 1]} : vector<16x34xf32> to vector<16x1xf32>
    %308 = vector.broadcast %305 : vector<1x64xf32> to vector<16x64xf32>
    %309 = arith.mulf %82, %308 : vector<16x64xf32>
    %cst_72 = arith.constant dense<0.000000e+00> : vector<16x64xf32>
    %310 = tpu.matmul %87, %309, %cst_72 {dimension_numbers = #tpu.dot_dimension_numbers<[1], [0], [0], [1], [0, 0, 1, 1], [], []>} : vector<16x16xf32>, vector<16x64xf32>, vector<16x64xf32> -> vector<16x64xf32>
    %311 = math.exp %310 : vector<16x64xf32>
    %312 = vector.broadcast %306 : vector<16x1xf32> to vector<16x64xf32>
    %313 = arith.mulf %83, %312 : vector<16x64xf32>
    %314 = arith.mulf %313, %311 : vector<16x64xf32>
    %cst_73 = arith.constant dense<0.000000e+00> : vector<16x64xf32>
    %315 = tpu.matmul %88, %314, %cst_73 {dimension_numbers = #tpu.dot_dimension_numbers<[1], [0], [0], [1], [0, 0, 1, 1], [], []>} : vector<16x16xf32>, vector<16x64xf32>, vector<16x64xf32> -> vector<16x64xf32>
    %cst_74 = arith.constant 9.99999996E-13 : f32
    %316 = vector.broadcast %cst_74 : f32 to vector<16x64xf32>
    %317 = arith.addf %311, %316 : vector<16x64xf32>
    %318 = tpu.reciprocal %317 {approx = true} : vector<16x64xf32> -> vector<16x64xf32>
    %319 = arith.mulf %315, %318 : vector<16x64xf32>
    %320 = vector.broadcast %307 : vector<16x1xf32> to vector<16x64xf32>
    %321 = arith.mulf %319, %320 : vector<16x64xf32>
    %322 = arith.addf %304, %321 : vector<16x64xf32>
    %323 = vector.extract_strided_slice %5 {offsets = [21, 0], sizes = [1, 64], strides = [1, 1]} : vector<24x64xf32> to vector<1x64xf32>
    %324 = vector.extract_strided_slice %67 {offsets = [0, 15], sizes = [16, 1], strides = [1, 1]} : vector<16x34xf32> to vector<16x1xf32>
    %325 = vector.extract_strided_slice %67 {offsets = [0, 31], sizes = [16, 1], strides = [1, 1]} : vector<16x34xf32> to vector<16x1xf32>
    %326 = vector.broadcast %323 : vector<1x64xf32> to vector<16x64xf32>
    %327 = arith.mulf %82, %326 : vector<16x64xf32>
    %cst_75 = arith.constant dense<0.000000e+00> : vector<16x64xf32>
    %328 = tpu.matmul %87, %327, %cst_75 {dimension_numbers = #tpu.dot_dimension_numbers<[1], [0], [0], [1], [0, 0, 1, 1], [], []>} : vector<16x16xf32>, vector<16x64xf32>, vector<16x64xf32> -> vector<16x64xf32>
    %329 = math.exp %328 : vector<16x64xf32>
    %330 = vector.broadcast %324 : vector<16x1xf32> to vector<16x64xf32>
    %331 = arith.mulf %83, %330 : vector<16x64xf32>
    %332 = arith.mulf %331, %329 : vector<16x64xf32>
    %cst_76 = arith.constant dense<0.000000e+00> : vector<16x64xf32>
    %333 = tpu.matmul %88, %332, %cst_76 {dimension_numbers = #tpu.dot_dimension_numbers<[1], [0], [0], [1], [0, 0, 1, 1], [], []>} : vector<16x16xf32>, vector<16x64xf32>, vector<16x64xf32> -> vector<16x64xf32>
    %cst_77 = arith.constant 9.99999996E-13 : f32
    %334 = vector.broadcast %cst_77 : f32 to vector<16x64xf32>
    %335 = arith.addf %329, %334 : vector<16x64xf32>
    %336 = tpu.reciprocal %335 {approx = true} : vector<16x64xf32> -> vector<16x64xf32>
    %337 = arith.mulf %333, %336 : vector<16x64xf32>
    %338 = vector.broadcast %325 : vector<16x1xf32> to vector<16x64xf32>
    %339 = arith.mulf %337, %338 : vector<16x64xf32>
    %340 = arith.addf %322, %339 : vector<16x64xf32>
    %341 = vector.extract_strided_slice %5 {offsets = [22, 0], sizes = [1, 64], strides = [1, 1]} : vector<24x64xf32> to vector<1x64xf32>
    %342 = vector.extract_strided_slice %67 {offsets = [0, 16], sizes = [16, 1], strides = [1, 1]} : vector<16x34xf32> to vector<16x1xf32>
    %343 = vector.extract_strided_slice %67 {offsets = [0, 32], sizes = [16, 1], strides = [1, 1]} : vector<16x34xf32> to vector<16x1xf32>
    %344 = vector.broadcast %341 : vector<1x64xf32> to vector<16x64xf32>
    %345 = arith.mulf %82, %344 : vector<16x64xf32>
    %cst_78 = arith.constant dense<0.000000e+00> : vector<16x64xf32>
    %346 = tpu.matmul %87, %345, %cst_78 {dimension_numbers = #tpu.dot_dimension_numbers<[1], [0], [0], [1], [0, 0, 1, 1], [], []>} : vector<16x16xf32>, vector<16x64xf32>, vector<16x64xf32> -> vector<16x64xf32>
    %347 = math.exp %346 : vector<16x64xf32>
    %348 = vector.broadcast %342 : vector<16x1xf32> to vector<16x64xf32>
    %349 = arith.mulf %83, %348 : vector<16x64xf32>
    %350 = arith.mulf %349, %347 : vector<16x64xf32>
    %cst_79 = arith.constant dense<0.000000e+00> : vector<16x64xf32>
    %351 = tpu.matmul %88, %350, %cst_79 {dimension_numbers = #tpu.dot_dimension_numbers<[1], [0], [0], [1], [0, 0, 1, 1], [], []>} : vector<16x16xf32>, vector<16x64xf32>, vector<16x64xf32> -> vector<16x64xf32>
    %cst_80 = arith.constant 9.99999996E-13 : f32
    %352 = vector.broadcast %cst_80 : f32 to vector<16x64xf32>
    %353 = arith.addf %347, %352 : vector<16x64xf32>
    %354 = tpu.reciprocal %353 {approx = true} : vector<16x64xf32> -> vector<16x64xf32>
    %355 = arith.mulf %351, %354 : vector<16x64xf32>
    %356 = vector.broadcast %343 : vector<16x1xf32> to vector<16x64xf32>
    %357 = arith.mulf %355, %356 : vector<16x64xf32>
    %358 = arith.addf %340, %357 : vector<16x64xf32>
    %359 = vector.extract_strided_slice %5 {offsets = [23, 0], sizes = [1, 64], strides = [1, 1]} : vector<24x64xf32> to vector<1x64xf32>
    %360 = vector.extract_strided_slice %67 {offsets = [0, 17], sizes = [16, 1], strides = [1, 1]} : vector<16x34xf32> to vector<16x1xf32>
    %361 = vector.extract_strided_slice %67 {offsets = [0, 33], sizes = [16, 1], strides = [1, 1]} : vector<16x34xf32> to vector<16x1xf32>
    %362 = vector.broadcast %359 : vector<1x64xf32> to vector<16x64xf32>
    %363 = arith.mulf %82, %362 : vector<16x64xf32>
    %cst_81 = arith.constant dense<0.000000e+00> : vector<16x64xf32>
    %364 = tpu.matmul %87, %363, %cst_81 {dimension_numbers = #tpu.dot_dimension_numbers<[1], [0], [0], [1], [0, 0, 1, 1], [], []>} : vector<16x16xf32>, vector<16x64xf32>, vector<16x64xf32> -> vector<16x64xf32>
    %365 = math.exp %364 : vector<16x64xf32>
    %366 = vector.broadcast %360 : vector<16x1xf32> to vector<16x64xf32>
    %367 = arith.mulf %83, %366 : vector<16x64xf32>
    %368 = arith.mulf %367, %365 : vector<16x64xf32>
    %cst_82 = arith.constant dense<0.000000e+00> : vector<16x64xf32>
    %369 = tpu.matmul %88, %368, %cst_82 {dimension_numbers = #tpu.dot_dimension_numbers<[1], [0], [0], [1], [0, 0, 1, 1], [], []>} : vector<16x16xf32>, vector<16x64xf32>, vector<16x64xf32> -> vector<16x64xf32>
    %cst_83 = arith.constant 9.99999996E-13 : f32
    %370 = vector.broadcast %cst_83 : f32 to vector<16x64xf32>
    %371 = arith.addf %365, %370 : vector<16x64xf32>
    %372 = tpu.reciprocal %371 {approx = true} : vector<16x64xf32> -> vector<16x64xf32>
    %373 = arith.mulf %369, %372 : vector<16x64xf32>
    %374 = vector.broadcast %361 : vector<16x1xf32> to vector<16x64xf32>
    %375 = arith.mulf %373, %374 : vector<16x64xf32>
    %376 = arith.addf %358, %375 : vector<16x64xf32>
    %cst_84 = arith.constant 0.000000e+00 : f32
    %377 = vector.broadcast %cst_84 : f32 to vector<16x64xf32>
    %378 = arith.subf %377, %25 : vector<16x64xf32>
    %379 = math.exp %378 : vector<16x64xf32>
    %cst_85 = arith.constant 1.000000e+00 : f32
    %380 = vector.broadcast %cst_85 : f32 to vector<16x64xf32>
    %381 = arith.addf %380, %379 : vector<16x64xf32>
    %cst_86 = arith.constant 1.000000e+00 : f32
    %382 = vector.broadcast %cst_86 : f32 to vector<16x64xf32>
    %383 = arith.divf %382, %381 : vector<16x64xf32>
    %384 = arith.mulf %25, %383 : vector<16x64xf32>
    %385 = arith.mulf %376, %384 : vector<16x64xf32>
    %386 = arith.truncf %385 : vector<16x64xf32> to vector<16x64xbf16>
    %c0_87 = arith.constant 0 : index
    %c0_88 = arith.constant 0 : index
    %c0_89 = arith.constant 0 : index
    %387 = vector.load %arg13[%c0_87, %c0_88, %c0_89] : memref<1x64x32xbf16, #tpu.memory_space<vmem>>, vector<1x64x32xbf16>
    %388 = vector.shape_cast %387 : vector<1x64x32xbf16> to vector<64x32xbf16>
    %cst_90 = arith.constant dense<0.000000e+00> : vector<16x32xf32>
    %389 = tpu.matmul %386, %388, %cst_90 {dimension_numbers = #tpu.dot_dimension_numbers<[1], [0], [0], [1], [0, 0, 1, 1], [], []>} : vector<16x64xbf16>, vector<64x32xbf16>, vector<16x32xf32> -> vector<16x32xf32>
    %390 = arith.addf %389, %3 : vector<16x32xf32>
    %c0_91 = arith.constant 0 : index
    %c0_92 = arith.constant 0 : index
    %391 = vector.load %arg18[%c0_91, %c0_92] : memref<16x32xf32, #tpu.memory_space<vmem>>, vector<16x32xf32>
    tpu.vector_store %arg18[%c0_91, %c0_92], %390 {strides = array<i32>} : memref<16x32xf32, #tpu.memory_space<vmem>>, vector<16x32xf32>,
    %c1_i32_93 = arith.constant 1 : i32
    %392 = arith.cmpi eq, %arg1, %c1_i32_93 : i32
    %393 = arith.extui %392 : i1 to i32
    %c0_i32_94 = arith.constant 0 : i32
    %394 = arith.cmpi ne, %393, %c0_i32_94 : i32
    scf.if %394 {
      %c0_95 = arith.constant 0 : index
      %c0_96 = arith.constant 0 : index
      %395 = vector.load %arg18[%c0_95, %c0_96] : memref<16x32xf32, #tpu.memory_space<vmem>>, vector<16x32xf32>
      %396 = arith.mulf %395, %395 : vector<16x32xf32>
      %cst_97 = arith.constant dense<0.000000e+00> : vector<16xf32>
      %397 = vector.multi_reduction <add>, %396, %cst_97 [1] : vector<16x32xf32> to vector<16xf32>
      %398 = vector.shape_cast %397 : vector<16xf32> to vector<16x1xf32>
      %cst_98 = arith.constant 3.200000e+01 : f32
      %399 = vector.broadcast %cst_98 : f32 to vector<16x1xf32>
      %400 = arith.divf %398, %399 : vector<16x1xf32>
      %cst_99 = arith.constant 9.99999974E-6 : f32
      %401 = vector.broadcast %cst_99 : f32 to vector<16x1xf32>
      %402 = arith.addf %400, %401 : vector<16x1xf32>
      %403 = math.rsqrt %402 : vector<16x1xf32>
      %404 = vector.broadcast %403 : vector<16x1xf32> to vector<16x32xf32>
      %405 = arith.mulf %395, %404 : vector<16x32xf32>
      %c0_100 = arith.constant 0 : index
      %c0_101 = arith.constant 0 : index
      %406 = vector.load %arg14[%c0_100, %c0_101] : memref<1x32xf32, #tpu.memory_space<vmem>>, vector<1x32xf32>
      %407 = vector.broadcast %406 : vector<1x32xf32> to vector<16x32xf32>
      %408 = arith.mulf %405, %407 : vector<16x32xf32>
      %409 = arith.truncf %408 : vector<16x32xf32> to vector<16x32xbf16>
      %c0_102 = arith.constant 0 : index
      %c0_103 = arith.constant 0 : index
      %410 = vector.load %arg15[%c0_102, %c0_103] : memref<1x32xbf16, #tpu.memory_space<vmem>>, vector<1x32xbf16>
      %cst_104 = arith.constant dense<0.000000e+00> : vector<1x16xf32>
      %411 = tpu.matmul %410, %409, %cst_104 {dimension_numbers = #tpu.dot_dimension_numbers<[1], [1], [0], [0], [0, 0, 1, 0], [], []>} : vector<1x32xbf16>, vector<16x32xbf16>, vector<1x16xf32> -> vector<1x16xf32>
      %c0_105 = arith.constant 0 : index
      %c0_106 = arith.constant 0 : index
      %412 = vector.load %arg16[%c0_105, %c0_106] : memref<1x1xf32, #tpu.memory_space<vmem>>, vector<1x1xf32>
      %413 = vector.broadcast %412 : vector<1x1xf32> to vector<1x16xf32>
      %414 = arith.addf %411, %413 : vector<1x16xf32>
      %c0_107 = arith.constant 0 : index
      %c0_108 = arith.constant 0 : index
      %c0_109 = arith.constant 0 : index
      %415 = vector.load %arg17[%c0_107, %c0_108, %c0_109] : memref<1x1x16xf32, #tpu.memory_space<vmem>>, vector<1x1x16xf32>
      %416 = vector.shape_cast %415 : vector<1x1x16xf32> to vector<1x16xf32>
      %417 = vector.shape_cast %414 : vector<1x16xf32> to vector<1x1x16xf32>
      tpu.vector_store %arg17[%c0_107, %c0_108, %c0_109], %417 {strides = array<i32>} : memref<1x1x16xf32, #tpu.memory_space<vmem>>, vector<1x1x16xf32>,
    } else {
    }
    return
  }
  func.func @transform_0(%arg0: i32, %arg1: i32) -> (i32, i32, i32) {
    %c0_i32 = arith.constant 0 : i32
    %c0_i32_0 = arith.constant 0 : i32
    %c0_i32_1 = arith.constant 0 : i32
    return %arg0, %c0_i32, %c0_i32_0 : i32, i32, i32
  }
  func.func @transform_1(%arg0: i32, %arg1: i32) -> (i32, i32) {
    %c0_i32 = arith.constant 0 : i32
    %c0_i32_0 = arith.constant 0 : i32
    %c0_i32_1 = arith.constant 0 : i32
    return %c0_i32, %c0_i32_0 : i32, i32
  }
  func.func @transform_2(%arg0: i32, %arg1: i32) -> (i32, i32) {
    %c0_i32 = arith.constant 0 : i32
    %c0_i32_0 = arith.constant 0 : i32
    %c0_i32_1 = arith.constant 0 : i32
    return %c0_i32, %c0_i32_0 : i32, i32
  }
  func.func @transform_3(%arg0: i32, %arg1: i32) -> (i32, i32) {
    %c0_i32 = arith.constant 0 : i32
    %c0_i32_0 = arith.constant 0 : i32
    %c0_i32_1 = arith.constant 0 : i32
    return %c0_i32, %c0_i32_0 : i32, i32
  }
  func.func @transform_4(%arg0: i32, %arg1: i32) -> (i32, i32) {
    %c0_i32 = arith.constant 0 : i32
    %c0_i32_0 = arith.constant 0 : i32
    %c0_i32_1 = arith.constant 0 : i32
    return %c0_i32, %c0_i32_0 : i32, i32
  }
  func.func @transform_5(%arg0: i32, %arg1: i32) -> (i32, i32) {
    %c0_i32 = arith.constant 0 : i32
    %c0_i32_0 = arith.constant 0 : i32
    %c0_i32_1 = arith.constant 0 : i32
    return %c0_i32, %c0_i32_0 : i32, i32
  }
  func.func @transform_6(%arg0: i32, %arg1: i32) -> (i32, i32, i32) {
    %c0_i32 = arith.constant 0 : i32
    %c0_i32_0 = arith.constant 0 : i32
    %c0_i32_1 = arith.constant 0 : i32
    return %arg1, %c0_i32, %c0_i32_0 : i32, i32, i32
  }
  func.func @transform_7(%arg0: i32, %arg1: i32) -> (i32, i32, i32) {
    %c0_i32 = arith.constant 0 : i32
    %c0_i32_0 = arith.constant 0 : i32
    %c0_i32_1 = arith.constant 0 : i32
    return %arg1, %c0_i32, %c0_i32_0 : i32, i32, i32
  }
  func.func @transform_8(%arg0: i32, %arg1: i32) -> (i32, i32, i32) {
    %c0_i32 = arith.constant 0 : i32
    %c0_i32_0 = arith.constant 0 : i32
    %c0_i32_1 = arith.constant 0 : i32
    return %arg1, %c0_i32, %c0_i32_0 : i32, i32, i32
  }
  func.func @transform_9(%arg0: i32, %arg1: i32) -> (i32, i32, i32) {
    %c0_i32 = arith.constant 0 : i32
    %c0_i32_0 = arith.constant 0 : i32
    %c0_i32_1 = arith.constant 0 : i32
    return %arg1, %c0_i32, %c0_i32_0 : i32, i32, i32
  }
  func.func @transform_10(%arg0: i32, %arg1: i32) -> (i32, i32, i32) {
    %c0_i32 = arith.constant 0 : i32
    %c0_i32_0 = arith.constant 0 : i32
    %c0_i32_1 = arith.constant 0 : i32
    return %arg1, %c0_i32, %c0_i32_0 : i32, i32, i32
  }
  func.func @transform_11(%arg0: i32, %arg1: i32) -> (i32, i32, i32) {
    %c0_i32 = arith.constant 0 : i32
    %c0_i32_0 = arith.constant 0 : i32
    %c0_i32_1 = arith.constant 0 : i32
    return %arg1, %c0_i32, %c0_i32_0 : i32, i32, i32
  }
  func.func @transform_12(%arg0: i32, %arg1: i32) -> (i32, i32) {
    %c0_i32 = arith.constant 0 : i32
    %c0_i32_0 = arith.constant 0 : i32
    %c0_i32_1 = arith.constant 0 : i32
    return %c0_i32, %c0_i32_0 : i32, i32
  }
  func.func @transform_13(%arg0: i32, %arg1: i32) -> (i32, i32) {
    %c0_i32 = arith.constant 0 : i32
    %c0_i32_0 = arith.constant 0 : i32
    %c0_i32_1 = arith.constant 0 : i32
    return %c0_i32, %c0_i32_0 : i32, i32
  }
  func.func @transform_14(%arg0: i32, %arg1: i32) -> (i32, i32) {
    %c0_i32 = arith.constant 0 : i32
    %c0_i32_0 = arith.constant 0 : i32
    %c0_i32_1 = arith.constant 0 : i32
    return %c0_i32, %c0_i32_0 : i32, i32
  }
  func.func @transform_15(%arg0: i32, %arg1: i32) -> (i32, i32, i32) {
    %c0_i32 = arith.constant 0 : i32
    %c0_i32_0 = arith.constant 0 : i32
    %c0_i32_1 = arith.constant 0 : i32
    return %arg0, %c0_i32, %c0_i32_0 : i32, i32, i32
  }
}

</mosaic_0001>

<bundles_post_ra>
// kernel: fwd.1
= control target key start
LH: loop header
LB: loop body
LE: loop exit
PB: predicated region body
PF: predicated region fallthrough
CT: control target
= control target key end

     0   :  { %s5590_s20 = smov 0   ;;  %s5592_s21 = smov 0   ;;  %s6352_s0 = inlined_call_operand.vmem [shape: f32[1,16,7], index: 0, kind: input, shape index: {}]   ;;  %s6353_s1 = inlined_call_operand.vmem [shape: bf16[7,32], index: 1, kind: input, shape index: {}]   ;;  %s6354_s2 = inlined_call_operand.vmem [shape: f32[1,32], index: 2, kind: input, shape index: {}]   ;;  %s6355_s3 = inlined_call_operand.vmem [shape: f32[16,16], index: 3, kind: input, shape index: {}]   ;;  %s6356_s4 = inlined_call_operand.vmem [shape: f32[16,16], index: 4, kind: input, shape index: {}]   ;;  %s6357_s5 = inlined_call_operand.vmem [shape: f32[16,4], index: 5, kind: input, shape index: {}]   ;;  %s6358_s6 = inlined_call_operand.vmem [shape: f32[2,24,64], index: 6, kind: input, shape index: {}]   ;;  %s6359_s7 = inlined_call_operand.vmem [shape: bf16[2,32,64], index: 7, kind: input, shape index: {}]   ;;  %s6360_s8 = inlined_call_operand.vmem [shape: bf16[2,32,64], index: 8, kind: input, shape index: {}]   ;;  %s6361_s9 = inlined_call_operand.vmem [shape: bf16[2,64,34], index: 9, kind: input, shape index: {}]   ;;  %s6362_s10 = inlined_call_operand.vmem [shape: bf16[2,2,64], index: 10, kind: input, shape index: {}]   ;;  %s6363_s11 = inlined_call_operand.vmem [shape: bf16[2,64,32], index: 11, kind: input, shape index: {}]   ;;  %s6364_s12 = inlined_call_operand.vmem [shape: f32[1,32], index: 12, kind: input, shape index: {}]   ;;  %s6365_s13 = inlined_call_operand.vmem [shape: bf16[1,32], index: 13, kind: input, shape index: {}]   ;;  %s6366_s14 = inlined_call_operand.<no memory space> [shape: f32[1,1], index: 14, kind: input, shape index: {}]   ;;  %s6367_s15 = inlined_call_operand.vmem [shape: f32[1,1,16], index: 15, kind: output, shape index: {}]  }
   0x1   :  { %6371 = sst [smem:[#allocation9_spill]] %s6359_s7  ;;  %v20_v0 = vstv %s6366_s14  ;;  %s5594_s22 = smov 0  }
   0x2   :  { %6372 = sst [smem:[#allocation10_spill]] %s6364_s12  ;;  %21 = vst [vmem:[#allocation3] sm:$0x1] %v20_v0 }
   0x3   :  { %6373 = sst [smem:[#allocation11_spill]] %s6365_s13 }
   0x4   :  { %6374 = sst [smem:[#allocation12_spill]] %s6367_s15 }
   0x5 LB: > { %6375 = sst [smem:[#allocation4_spill]] %s5459_s21  ;;  %s36_s14 = sadd.s32 1, %s5459_s21  ;;  %s5463_s22 = sphi %s5594_s22, %s27_s22   ;;  %s5459_s21 = sphi %s5592_s21, %s6388_s21   ;;  %s5455_s20 = sphi %s5590_s20, %s6387_s20  }
   0x6   : > { %6376 = sst [smem:[#allocation5_spill]] %s5463_s22  ;;  %p4467_p0 = scmp.ge.s32.totalorder %s5463_s22, 1 }
   0x7   : > { %p37_p1 = scmp.ge.s32.totalorder %s36_s14, 2  ;;  %p509_p2 = scmp.lt.s32.totalorder %s5463_s22, 3 }
   0x9   : > { %s6390_s14 = smov (%p37_p1, %s36_s14), 0  ;;  %p510_p3 = pnand %p4467_p0, %p509_p2 }
   0xa   : > { %6377 = sst [smem:[#allocation6_spill]] %s6390_s14 }
   0xb   : > { %513 = sbr.rel (%p510_p3) target bundleno = 2287 (0x8ef), region = 80 }
  0x12   : > { %p588_p4 = scmp.lt.s32.totalorder %s5455_s20, 1  ;;  %s6378_s7 = sld [smem:[#allocation9_spill]] }
  0x13   : > { %p4477_p5 = scmp.ne.s32.totalorder %s5455_s20, 0 }
  0x14   : > { %s5612_s23 = scalar_select %p588_p4, %s5455_s20, 1 }
  0x15   : > { %623 = sbr.rel (%p4477_p5) target bundleno = 247 (0xf7), region = 84  ;;  %v627_v1 = vld [vmem:[%s6353_s1] sm:$0xf] (!%p4477_p5)  ;;  %vm639_vm0 = vcmask (!%p4477_p5), 1042432   ;;  %vm640_vm1 = vcmask (!%p4477_p5), 1043456   ;;  %v5465_v2 = vmov (!%p4477_p5), 0.0  }
  0x16   : > { %s5131_s24 = smul.u32 24, %s5612_s23  ;;  %s4567_s25 = sshll.u32 %s5612_s23, 4  ;;  %4721 = vmatprep.subr.bf16.mxu0 (!%p4477_p5), %v5465_v2  ;;  %v5466_v3 = vmov (!%p4477_p5), 65535   ;;  %v624_v5 = vld [vmem:[%s6352_s0] sm:$0xff] (!%p4477_p5)  ;;  %v625_v6 = vld [vmem:[%s6352_s0 + $0x8] sm:$0xff] (!%p4477_p5)  ;;  %vm5467_vm2 = vmmov (!%p4477_p5), 0  }
  0x17   : > { %s5624_s16 = scalar_lea.vmem %s6360_s8, %s4567_s25  ;;  %s4569_s14 = sshll.u32 %s5612_s23, 5  ;;  %v641_v4 = vsel (!%p4477_p5), %vm639_vm0, 4294967295, %v5466_v3  ;;  %4723 = vmatprep.mubr.msk.bf16.mxu0 (!%p4477_p5), %vm5467_vm2, %v5465_v2  ;;  %v626_v9 = vpack.c.bf16 (!%p4477_p5), %v625_v6, %v624_v5  ;;  %vm635_vm3 = vcmask (!%p4477_p5), 56320   ;;  %v4478_v10 = vld [vmem:[%s6354_s2] ss:$0 sm:$0xff] (!%p4477_p5)  ;;  %vm687_vm4 = vcmask (!%p4477_p5), 261120  }
  0x18   : > { %s5619_s28 = scalar_lea.vmem %s6378_s7, %s4567_s25  ;;  %s5629_s19 = scalar_lea.vmem %s6358_s6, %s5131_s24  ;;  %v642_v7 = vsel (!%p4477_p5), %vm640_vm1, %v641_v4, 0 }
  0x19   : > { %s5635_s15 = scalar_lea.vmem %s6361_s9, %s4569_s14  ;;  %s610_s27 = scalar_lea.vmem %s6362_s10, %s5612_s23  ;;  %v644_v8 = vand.u32 (!%p4477_p5), %v642_v7, %v627_v1 }
  0x1a   : > { %s5644_s25 = scalar_lea.vmem %s6363_s11, %s4569_s14 }
  0x1b   : > { %4722 = vmatpush3.bf16.msra.mxu0 (!%p4477_p5), %v644_v8 }
  0x1e   : > { %4724 = vmatmul.mubr.msk.bf16.vlgmr.msra.gmra.mrb[0].mxu0 %vm635_vm3, %v626_v9 }
  0xf1   : > { %v680_v11 = vpop.f32.mrb[0].mxu0 }
  0xf2   : > { %v681_v12 = vadd.f32 %v4478_v10, %v680_v11  ;;  %v4725_v13 = vpop.f32.mrb[1].mxu0 }
  0xf3   : > { %v683_v14 = vpop.f32.mrb[2].mxu0 }
  0xf4   : > { %688 = vst.msk [vmem:[#allocation2] sm:$0xff] %vm687_vm4, %v681_v12  ;;  %v684_v15 = vadd.f32 %v4478_v10, %v683_v14  ;;  %v4726_v16 = vpop.f32.mrb[3].mxu0 }
  0xf6   : > { %689 = vst.msk [vmem:[#allocation2 + $0x8] sm:$0xff] %vm687_vm4, %v684_v15 }
  0xf7 PF: > { %vm697_vm5 = vcmask 261120   ;;  %v5264_v23 = vld [vmem:[%s5619_s28] sm:$0xff]   ;;  %v5468_v24 = vmov 0.0   ;;  %vm5469_vm6 = vmmov 0   ;;  %v5265_v25 = vld [vmem:[%s5619_s28 + $0x8] sm:$0xff]   ;;  %v5470_v27 = vmov 0  }
  0xf8   : > { %4727 = vmatprep.subr.bf16.mxu1 %v5468_v24  ;;  %4731 = vmatprep.mubr.msk.bf16.mxu1 %vm5469_vm6, %v5468_v24  ;;  %v850_v26 = vld [vmem:[%s6357_s5] sm:$0xff]  ;;  %v5471_v28 = vmov 1   ;;  %v851_v29 = vld [vmem:[%s6357_s5 + $0x8] sm:$0xff]  ;;  %v5472_v30 = vmov 2   ;;  %v713_v36 = vlaneseq  ;;  %v5270_v53 = vld [vmem:[%s5635_s15 + $0x10] sm:$0xff]   ;;  %v5473_v55 = vmov 6  }
  0xf9   : > { %4728 = vmatpush3.bf16.msra.mxu1 %v5264_v23  ;;  %4743 = vmatprep.subr.bf16.mxu0 %v5468_v24  ;;  %v5684_v41 = vld [vmem:[%s5629_s19] sm:$0xff]  ;;  %v5267_v50 = vld [vmem:[%s5624_s16 + $0x8] sm:$0xff]   ;;  %v5271_v54 = vld [vmem:[%s5635_s15 + $0x18] sm:$0xff]   ;;  %vm971_vm10 = vcmask 523264   ;;  %vm1026_vm11 = vcmask 1040384   ;;  %vm1022_vm12 = vcmask 15360  }
  0xfa   : > { %4729 = vmatprep.subr.bf16.mxu1 %v5468_v24  ;;  %4751 = vmatprep.mubr.msk.bf16.mxu0 %vm5469_vm6, %v5468_v24  ;;  %v5678_v38 = vshrl.u32 %v713_v36, 7  ;;  %v5266_v48 = vld [vmem:[%s5624_s16] sm:$0xff]   ;;  %v5269_v52 = vld [vmem:[%s5635_s15 + $0x8] sm:$0xff]   ;;  %vm1103_vm13 = vcmask 130048   ;;  %p4561_p6 = scmp.ne.s32.totalorder %s5455_s20, 1 }
  0xfb   : > { %v690_v17 = vld [vmem:[#allocation2] sm:$0xff]  ;;  %5198 = vset.pattern.permute.xlu1 %v5470_v27  ;;  %5199 = vset.pattern.permute.xlu0 %v5471_v28  ;;  %vm5505_vm0 = vmmov (!%p4561_p6), 0   ;;  %s6383_s14 = sld [smem:[#allocation11_spill]] (!%p4561_p6)  ;;  %vm4336_vm1 = vcmask (!%p4561_p6), 122880   ;;  %s6385_s28 = sld [smem:[#allocation12_spill]] (!%p4561_p6) }
  0xfc   : > { %v695_v19 = vmul.f32 %v690_v17, %v690_v17  ;;  %854 = vperm.xlu1 %5198, %v850_v26   ;;  %v5681_v39 = vsub.s32 7, %v5678_v38  ;;  %v5268_v51 = vld [vmem:[%s5635_s15] sm:$0xff]   ;;  %v5707_v60 = vsub.s32 3, %v5678_v38  ;;  %v5710_v62 = vsub.s32 0, %v5678_v38 }
  0xfd   : > { %v691_v18 = vld [vmem:[#allocation2 + $0x8] sm:$0xff]  ;;  %4730 = vmatpush3.bf16.msra.mxu1 %v5265_v25  ;;  %4744 = vmatpush3.bf16.msra.mxu0 %v5268_v51  ;;  %vm847_vm7 = vcmp.lt.s32.totalorder %v5678_v38, 3  ;;  %vm897_vm8 = vcmp.lt.s32.totalorder %v5678_v38, 1  ;;  %v5715_v2 = vsub.s32 2, %v5678_v38  ;;  %v5718_v3 = vsub.s32 1, %v5678_v38 }
  0xfe   : > { %v696_v20 = vmul.f32 %v691_v18, %v691_v18  ;;  %v698_v21 = vsel %vm697_vm5, %v695_v19, 0.0  ;;  %4735 = vmatprep.subr.bf16.mxu1 %v5468_v24  ;;  %v716_v43 = vrot.slane %v5684_v41, %v5681_v39  ;;  %4745 = vmatprep.subr.bf16.mxu0 %v5468_v24  ;;  %6379 = vst [vmem:[#allocation7_spill] sm:$0xff] %v5710_v62  ;;  %vm874_vm9 = vcmp.lt.s32.totalorder %v5678_v38, 2 }
  0xff   : > { %699 = vadd.xlane.f32.xlu0 %v698_v21  ;;  %v840_v9 = vrot.slane %v5684_v41, %v5707_v60  ;;  %v867_v11 = vrot.slane %v5684_v41, %v5710_v62  ;;  %v890_v23 = vrot.slane %v5684_v41, %v5718_v3  ;;  %v5734_v25 = vsub.s32 4, %v5678_v38 }
 0x100   : > { %v701_v22 = vsel %vm697_vm5, %v696_v20, 0.0  ;;  %859 = vperm.xlu1 %5198, %v851_v29  }
 0x101   : > { %4746 = vmatpush3.bf16.msra.mxu0 %v5269_v52 }
 0x102   : > { %4747 = vmatprep.subr.bf16.mxu0 %v5468_v24 }
 0x103   : > { %702 = vadd.xlane.f32.xlu0 %v701_v22 }
 0x104   : > { %5200 = vset.pattern.permute.xlu1 %v5471_v28 }
 0x105   : > { %882 = vperm.xlu1 %5200, %v851_v29   ;;  %4748 = vmatpush3.bf16.msra.mxu0 %v5270_v53 }
 0x106   : > { %4749 = vmatprep.subr.bf16.mxu0 %v5468_v24 }
 0x109   : > { %5201 = vset.pattern.permute.xlu1 %v5472_v30  ;;  %4750 = vmatpush3.bf16.msra.mxu0 %v5271_v54 }
 0x10a   : > { %901 = vperm.xlu1 %5201, %v850_v26  }
 0x10e   : > { %905 = vperm.xlu1 %5201, %v851_v29  }
 0x119   : > { %878 = vperm.xlu0 %5199, %v850_v26  }
 0x11d   : > { %5205 = vset.pattern.permute.xlu0 %v5473_v55 }
 0x17b   : > { %v855_v56 = vpop.permute.xlu1 %854 }
 0x17f   : > { %v860_v57 = vpop.permute.xlu1 %859 }
 0x184   : > { %v883_v58 = vpop.permute.xlu1 %882 }
 0x189   : > { %v902_v61 = vpop.permute.xlu1 %901 }
 0x18c   : > { %v700_v31 = vpop.xlane.xlu0 %699 }
 0x18d   : > { %v705_v32 = vmul.f32 0.03125, %v700_v31 }
 0x18f   : > { %v707_v33 = vadd.f32 1e-05, %v705_v32 }
 0x190   : > { %v703_v34 = vpop.xlane.xlu0 %702 }
 0x191   : > { %5276 = vrsqrt.f32 %v707_v33  ;;  %v706_v35 = vmul.f32 0.03125, %v703_v34 }
 0x193   : > { %v708_v37 = vadd.f32 1e-05, %v706_v35 }
 0x195   : > { %5278 = vrsqrt.f32 %v708_v37 }
 0x198   : > { %v879_v20 = vpop.permute.xlu0 %878 }
 0x19b   : > { %v5277_v40 = vpop.eup %5276 }
 0x19c   : > { %v711_v42 = vmul.f32 %v5277_v40, %v690_v17  ;;  %v906_v17 = vpop.permute.xlu1 %905 }
 0x19e   : > { %v717_v46 = vmul.f32 %v716_v43, %v711_v42 }
 0x19f   : > { %v5279_v44 = vpop.eup %5278 }
 0x1a0   : > { %v712_v45 = vmul.f32 %v5279_v44, %v691_v18  ;;  %v913_v18 = vrot.slane %v5684_v41, %v5715_v2 }
 0x1a2   : > { %v718_v47 = vmul.f32 %v716_v43, %v712_v45 }
 0x1a4   : > { %v719_v49 = vpack.c.bf16 %v718_v47, %v717_v46  ;;  %v921_v46 = vrot.slane %v5684_v41, %v5734_v25 }
 0x1a6   : > { %4732 = vmatmul.mubr.msk.bf16.vlgmr.msra.gmra.mrb[0].mxu1 %vm697_vm5, %v719_v49 }
 0x1a7   : > { %4736 = vmatpush3.bf16.msra.mxu1 %v5266_v48  ;;  %4739 = vmatprep.mubr.msk.bf16.mxu1 %vm5469_vm6, %v5468_v24 }
 0x1a8   : > { %4737 = vmatprep.subr.bf16.mxu1 %v5468_v24 }
 0x1ab   : > { %4738 = vmatpush3.bf16.msra.mxu1 %v5267_v50 }
 0x1ac   : > { %4755 = vmatprep.subr.bf16.mxu1 %v5468_v24 }
 0x1ae   : > { %4740 = vmatmul.mubr.msk.bf16.vlgmr.msra.gmra.mrb[4].mxu1 %vm697_vm5, %v719_v49 }
 0x1af   : > { %4757 = vmatprep.mubr.msk.bf16.mxu1 %vm5469_vm6, %v5468_v24 }
 0x279   : > { %v773_v59 = vpop.f32.mrb[0].mxu1 }
 0x27a   : > { %v4733_v63 = vpop.f32.mrb[1].mxu1  ;;  %v843_v0 = vrot.slane %v773_v59, 5  ;;  %v895_v4 = vrot.slane %v773_v59, 7  ;;  %v872_v10 = vrot.slane %v773_v59, 6  ;;  %v841_v26 = vmul.f32 %v840_v9, %v773_v59 }
 0x27b   : > { %v776_v1 = vpop.f32.mrb[2].mxu1 }
 0x27c   : > { %v844_v5 = vrot.slane %v776_v1, 5  ;;  %v873_v6 = vrot.slane %v776_v1, 6  ;;  %v896_v7 = vrot.slane %v776_v1, 7  ;;  %v4734_v8 = vpop.f32.mrb[3].mxu1  ;;  %v842_v27 = vmul.f32 %v840_v9, %v776_v1  ;;  %v1017_v9 = vld [vmem:[%s610_s27] sm:$0x1] }
 0x27e   : > { %v848_v12 = vsel %vm847_vm7, %v843_v0, %v844_v5  ;;  %v849_v13 = vsel %vm847_vm7, %v844_v5, %v843_v0  ;;  %v898_v14 = vsel %vm897_vm8, %v895_v4, %v896_v7  ;;  %v899_v15 = vsel %vm897_vm8, %v896_v7, %v895_v4 }
 0x27f   : > { %v863_v16 = vmul.f32 %v860_v57, %v848_v12  ;;  %v862_v19 = vmul.f32 %v855_v56, %v849_v13  ;;  %v875_v21 = vsel %vm874_vm9, %v872_v10, %v873_v6  ;;  %v876_v22 = vsel %vm874_vm9, %v873_v6, %v872_v10 }
 0x280   : > { %v908_v32 = vmul.f32 %v902_v61, %v899_v15  ;;  %v909_v33 = vmul.f32 %v906_v17, %v898_v14  ;;  %v886_v34 = vmul.f32 %v883_v58, %v875_v21  ;;  %v885_v35 = vmul.f32 %v879_v20, %v876_v22 }
 0x281   : > { %v869_v28 = vmul.f32 %v867_v11, %v863_v16  ;;  %v868_v29 = vmul.f32 %v867_v11, %v862_v19  ;;  %v5736_v31 = vpop.f32.mrb[4].mxu1  ;;  %v1028_v10 = vsel %vm1026_vm11, %v1017_v9, 0  ;;  %v5474_v16 = vmov 9   ;;  %v693_v9 = vld [vmem:[%s5629_s19 + $0x8] sm:$0xff] }
 0x282   : > { %v4741_v36 = vpop.f32.mrb[5].mxu1  ;;  %v892_v43 = vmul.f32 %v890_v23, %v886_v34  ;;  %v891_v44 = vmul.f32 %v890_v23, %v885_v35  ;;  %v914_v47 = vmul.f32 %v913_v18, %v908_v32  ;;  %v915_v48 = vmul.f32 %v913_v18, %v909_v33  ;;  %4756 = vmatpush3.bf16.msra.mxu1 %v1028_v10 }
 0x283   : > { %v871_v37 = vadd.f32 %v869_v28, %v842_v27  ;;  %v870_v40 = vadd.f32 %v868_v29, %v841_v26  ;;  %v5738_v42 = vpop.f32.mrb[6].mxu1  ;;  %v5475_v17 = vmov 3   ;;  %v5476_v18 = vmov 7  }
 0x284   : > { %v4742_v45 = vpop.f32.mrb[7].mxu1  ;;  %v5477_v19 = vmov 4   ;;  %v5478_v20 = vmov 12   ;;  %v5479_v21 = vmov 5   ;;  %v5480_v22 = vmov 10  }
 0x285   : > { %v894_v49 = vadd.f32 %v892_v43, %v871_v37  ;;  %v893_v50 = vadd.f32 %v891_v44, %v870_v40  ;;  %v5481_v23 = vmov 13   ;;  %v5482_v26 = vmov 8  }
 0x286   : > { %v5483_v27 = vmov 15   ;;  %v5484_v28 = vmov 16   ;;  %v5485_v29 = vmov 11   ;;  %v5486_v32 = vmov 18  }
 0x287   : > { %v917_v51 = vadd.f32 %v915_v48, %v894_v49  ;;  %v916_v52 = vadd.f32 %v914_v47, %v893_v50  ;;  %v5487_v33 = vmov 21   ;;  %v5488_v34 = vmov 24   ;;  %v5822_v48 = vld [vmem:[%s6356_s4] sm:$0xff] }
 0x288   : > { %v5490_v35 = vmov 30   ;;  %v5491_v36 = vmov 19   ;;  %v5492_v37 = vmov 22   ;;  %v5493_v40 = vmov 25  }
 0x289   : > { %v922_v53 = vadd.f32 %v921_v46, %v916_v52  ;;  %v923_v54 = vadd.f32 %v921_v46, %v917_v51  ;;  %v5495_v43 = vmov 14   ;;  %v5496_v44 = vmov 31  }
 0x28a   : > { %v5497_v45 = vmov 33   ;;  %v5498_v46 = vmov 17   ;;  %v5499_v47 = vmov 20   ;;  %v5500_v49 = vmov 23  }
 0x28b   : > { %v924_v56 = vsub.f32 0.0, %v922_v53  ;;  %v925_v57 = vsub.f32 0.0, %v923_v54  ;;  %v5501_v50 = vmov 26   ;;  %v5502_v51 = vmov 29  }
 0x28c   : > { %v5503_v52 = vmov 32  }
 0x28d   : > { %v926_v58 = vmul.f32 1.442695, %v924_v56  ;;  %v928_v59 = vmul.f32 1.442695, %v925_v57 }
 0x28f   : > { %5280 = vpow2.f32 %v926_v58 }
 0x290   : > { %5282 = vpow2.f32 %v928_v59 }
 0x299   : > { %v5281_v61 = vpop.eup %5280 }
 0x29a   : > { %v5283_v63 = vpop.eup %5282  ;;  %v930_v0 = vadd.f32 1.0, %v5281_v61 }
 0x29b   : > { %v931_v1 = vadd.f32 1.0, %v5283_v63 }
 0x29c   : > { %5284 = vrcp.f32 %v930_v0 }
 0x29d   : > { %5286 = vrcp.f32 %v931_v1 }
 0x2a6   : > { %v5285_v4 = vpop.eup %5284 }
 0x2a7   : > { %v5287_v5 = vpop.eup %5286  ;;  %v5742_v6 = vmul.f32 %v5285_v4, %v922_v53  ;;  %v1020_v53 = vsub.s32 5, %v5678_v38 }
 0x2a8   : > { %v5744_v7 = vmul.f32 %v5287_v5, %v923_v54 }
 0x2a9   : > { %v1021_v54 = vrot.slane %v5684_v41, %v1020_v53 }
 0x2aa   : > { %v938_v8 = vpack.c.bf16 %v5744_v7, %v5742_v6 }
 0x2ac   : > { %4752 = vmatmul.mubr.msk.bf16.vlgmr.msra.gmra.mrb[0].mxu0 %vm971_vm10, %v938_v8 }
 0x2ad   : > { %4779 = vmatprep.mubr.msk.f32.mxu0 %vm1103_vm13, %v5822_v48 }
 0x37f   : > { %v5754_v11 = vpop.f32.mrb[0].mxu0 }
 0x380   : > { %1958 = vperm.xlu0 %5205, %v5754_v11   ;;  %1191 = vperm.xlu1 %5201, %v5754_v11   ;;  %v4753_v12 = vpop.f32.mrb[1].mxu0 }
 0x381   : > { %v5758_v13 = vpop.f32.mrb[2].mxu0  ;;  %v1305_v12 = vrot.slane %v693_v9, %v5718_v3 }
 0x382   : > { %v4754_v14 = vpop.f32.mrb[3].mxu0  ;;  %v1016_v15 = vpack.c.bf16 %v5758_v13, %v5754_v11 }
 0x383   : > { %v5859_v14 = vsub.s32 6, %v5678_v38 }
 0x384   : > { %5208 = vset.pattern.permute.xlu0 %v5474_v16  ;;  %5202 = vset.pattern.permute.xlu1 %v5475_v17 }
 0x385   : > { %4758 = vmatmul.mubr.msk.bf16.vlgmr.msra.gmra.mrb[8].mxu1 %vm1022_vm12, %v1016_v15  ;;  %2528 = vperm.xlu0 %5208, %v5754_v11   ;;  %v694_v15 = vld [vmem:[%s5629_s19 + $0x10] sm:$0xff] }
 0x386   : > { %1388 = vperm.xlu1 %5202, %v5754_v11   ;;  %4765 = vmatprep.mubr.msk.f32.mxu1 %vm1103_vm13, %v5822_v48  ;;  %v2635_v38 = vrot.slane %v694_v15, %v5710_v62 }
 0x389   : > { %5216 = vset.pattern.permute.xlu0 %v5476_v18 }
 0x38a   : > { %5203 = vset.pattern.permute.xlu1 %v5477_v19  ;;  %2152 = vperm.xlu0 %5216, %v5758_v13  }
 0x38b   : > { %1578 = vperm.xlu1 %5203, %v5754_v11  }
 0x38e   : > { %5217 = vset.pattern.permute.xlu0 %v5478_v20 }
 0x38f   : > { %5204 = vset.pattern.permute.xlu1 %v5479_v21  ;;  %3098 = vperm.xlu0 %5217, %v5754_v11  }
 0x390   : > { %1768 = vperm.xlu1 %5204, %v5754_v11  }
 0x393   : > { %5222 = vset.pattern.permute.xlu0 %v5480_v22 }
 0x394   : > { %5206 = vset.pattern.permute.xlu1 %v5476_v18  ;;  %2722 = vperm.xlu0 %5222, %v5758_v13   ;;  %v1875_v18 = vrot.slane %v693_v9, %v5734_v25 }
 0x395   : > { %2148 = vperm.xlu1 %5206, %v5754_v11  }
 0x398   : > { %5225 = vset.pattern.permute.xlu0 %v5481_v23 }
 0x399   : > { %5207 = vset.pattern.permute.xlu1 %v5482_v26  ;;  %3292 = vperm.xlu0 %5225, %v5758_v13  }
 0x39a   : > { %2338 = vperm.xlu1 %5207, %v5754_v11  }
 0x39d   : > { %5226 = vset.pattern.permute.xlu0 %v5483_v27 }
 0x39e   : > { %5209 = vset.pattern.permute.xlu1 %v5480_v22  ;;  %3668 = vperm.xlu0 %5226, %v5754_v11   ;;  %v2445_v22 = vrot.slane %v693_v9, %v5681_v39 }
 0x39f   : > { %2718 = vperm.xlu1 %5209, %v5754_v11  }
 0x3a2   : > { %5230 = vset.pattern.permute.xlu0 %v5484_v28 }
 0x3a3   : > { %5210 = vset.pattern.permute.xlu1 %v5485_v29  ;;  %3862 = vperm.xlu0 %5230, %v5758_v13  }
 0x3a4   : > { %2908 = vperm.xlu1 %5210, %v5754_v11  }
 0x3a7   : > { %5232 = vset.pattern.permute.xlu0 %v5486_v32 }
 0x3a8   : > { %5211 = vset.pattern.permute.xlu1 %v5472_v30  ;;  %1291 = vperm.xlu0 %5232, %v5754_v11   ;;  %v5489_v30 = vmov 27  }
 0x3a9   : > { %1196 = vperm.xlu1 %5211, %v5758_v13  }
 0x3ac   : > { %5235 = vset.pattern.permute.xlu0 %v5487_v33 }
 0x3ad   : > { %5212 = vset.pattern.permute.xlu1 %v5475_v17  ;;  %1861 = vperm.xlu0 %5235, %v5754_v11   ;;  %v1685_v17 = vrot.slane %v693_v9, %v5707_v60 }
 0x3ae   : > { %1392 = vperm.xlu1 %5212, %v5758_v13  }
 0x3b1   : > { %5238 = vset.pattern.permute.xlu0 %v5488_v34 }
 0x3b2   : > { %5213 = vset.pattern.permute.xlu1 %v5477_v19  ;;  %2431 = vperm.xlu0 %5238, %v5754_v11  }
 0x3b3   : > { %1582 = vperm.xlu1 %5213, %v5758_v13  }
 0x3b6   : > { %5241 = vset.pattern.permute.xlu0 %v5489_v30 }
 0x3b7   : > { %5214 = vset.pattern.permute.xlu1 %v5479_v21  ;;  %3001 = vperm.xlu0 %5241, %v5754_v11   ;;  %v2255_v21 = vrot.slane %v693_v9, %v5859_v14 }
 0x3b8   : > { %1772 = vperm.xlu1 %5214, %v5758_v13  }
 0x3bb   : > { %5244 = vset.pattern.permute.xlu0 %v5490_v35 }
 0x3bc   : > { %5215 = vset.pattern.permute.xlu1 %v5473_v55  ;;  %3571 = vperm.xlu0 %5244, %v5754_v11   ;;  %v5494_v55 = vmov 28  }
 0x3bd   : > { %1962 = vperm.xlu1 %5215, %v5758_v13  }
 0x3c0   : > { %5248 = vset.pattern.permute.xlu0 %v5491_v36 }
 0x3c1   : > { %5218 = vset.pattern.permute.xlu1 %v5481_v23  ;;  %1485 = vperm.xlu0 %5248, %v5758_v13  }
 0x3c2   : > { %3288 = vperm.xlu1 %5218, %v5754_v11  }
 0x3c5   : > { %5251 = vset.pattern.permute.xlu0 %v5492_v37 }
 0x3c6   : > { %5219 = vset.pattern.permute.xlu1 %v5482_v26  ;;  %2055 = vperm.xlu0 %5251, %v5758_v13  }
 0x3c7   : > { %2342 = vperm.xlu1 %5219, %v5758_v13  }
 0x3ca   : > { %5254 = vset.pattern.permute.xlu0 %v5493_v40 }
 0x3cb   : > { %5220 = vset.pattern.permute.xlu1 %v5474_v16  ;;  %2625 = vperm.xlu0 %5254, %v5758_v13   ;;  %v1495_v16 = vrot.slane %v693_v9, %v5715_v2 }
 0x3cc   : > { %2532 = vperm.xlu1 %5220, %v5758_v13  }
 0x3cf   : > { %5257 = vset.pattern.permute.xlu0 %v5494_v55 }
 0x3d0   : > { %5221 = vset.pattern.permute.xlu1 %v5495_v43  ;;  %3195 = vperm.xlu0 %5257, %v5758_v13  }
 0x3d1   : > { %3478 = vperm.xlu1 %5221, %v5754_v11  }
 0x3d4   : > { %5260 = vset.pattern.permute.xlu0 %v5496_v44 }
 0x3d5   : > { %5223 = vset.pattern.permute.xlu1 %v5485_v29  ;;  %3765 = vperm.xlu0 %5260, %v5758_v13   ;;  %v3205_v29 = vrot.slane %v694_v15, %v5707_v60 }
 0x3d6   : > { %2912 = vperm.xlu1 %5223, %v5758_v13  }
 0x3d9   : > { %5262 = vset.pattern.permute.xlu0 %v5497_v45 }
 0x3da   : > { %5224 = vset.pattern.permute.xlu1 %v5478_v20  ;;  %4141 = vperm.xlu0 %5262, %v5754_v11   ;;  %v2065_v20 = vrot.slane %v693_v9, %v1020_v53 }
 0x3db   : > { %3102 = vperm.xlu1 %5224, %v5758_v13  }
 0x3df   : > { %5227 = vset.pattern.permute.xlu1 %v5484_v28  ;;  %v3015_v28 = vrot.slane %v694_v15, %v5715_v2 }
 0x3e0   : > { %3858 = vperm.xlu1 %5227, %v5754_v11  }
 0x3e4   : > { %5228 = vset.pattern.permute.xlu1 %v5495_v43 }
 0x3e5   : > { %3482 = vperm.xlu1 %5228, %v5758_v13  }
 0x3e9   : > { %5229 = vset.pattern.permute.xlu1 %v5483_v27  ;;  %v2825_v27 = vrot.slane %v694_v15, %v5718_v3 }
 0x3ea   : > { %3672 = vperm.xlu1 %5229, %v5758_v13  }
 0x3ee   : > { %5231 = vset.pattern.permute.xlu1 %v5498_v46  ;;  %v3965_v46 = vrot.slane %v694_v15, %v5681_v39 }
 0x3ef   : > { %4048 = vperm.xlu1 %5231, %v5754_v11  }
 0x3f3   : > { %4052 = vperm.xlu1 %5231, %v5758_v13  }
 0x3f7   : > { %5233 = vset.pattern.permute.xlu1 %v5491_v36 }
 0x3f8   : > { %1481 = vperm.xlu1 %5233, %v5754_v11  }
 0x3fc   : > { %5234 = vset.pattern.permute.xlu1 %v5499_v47 }
 0x3fd   : > { %1671 = vperm.xlu1 %5234, %v5754_v11  }
 0x401   : > { %5236 = vset.pattern.permute.xlu1 %v5492_v37 }
 0x402   : > { %2051 = vperm.xlu1 %5236, %v5754_v11  }
 0x406   : > { %5237 = vset.pattern.permute.xlu1 %v5500_v49 }
 0x407   : > { %2241 = vperm.xlu1 %5237, %v5754_v11  }
 0x40b   : > { %5239 = vset.pattern.permute.xlu1 %v5493_v40 }
 0x40c   : > { %2621 = vperm.xlu1 %5239, %v5754_v11  }
 0x410   : > { %5240 = vset.pattern.permute.xlu1 %v5501_v50 }
 0x411   : > { %2811 = vperm.xlu1 %5240, %v5754_v11  }
 0x415   : > { %5242 = vset.pattern.permute.xlu1 %v5494_v55 }
 0x416   : > { %3191 = vperm.xlu1 %5242, %v5754_v11  }
 0x41a   : > { %5243 = vset.pattern.permute.xlu1 %v5502_v51 }
 0x41b   : > { %3381 = vperm.xlu1 %5243, %v5754_v11  }
 0x41f   : > { %5245 = vset.pattern.permute.xlu1 %v5496_v44 }
 0x420   : > { %3761 = vperm.xlu1 %5245, %v5754_v11  }
 0x424   : > { %5246 = vset.pattern.permute.xlu1 %v5503_v52 }
 0x425   : > { %3951 = vperm.xlu1 %5246, %v5754_v11   ;;  %v1100_v11 = vrot.slane %v693_v9, %v5710_v62 }
 0x429   : > { %5247 = vset.pattern.permute.xlu1 %v5486_v32  ;;  %v3395_v32 = vrot.slane %v694_v15, %v5734_v25 }
 0x42a   : > { %1295 = vperm.xlu1 %5247, %v5758_v13  }
 0x42e   : > { %5249 = vset.pattern.permute.xlu1 %v5499_v47 }
 0x42f   : > { %1675 = vperm.xlu1 %5249, %v5758_v13  }
 0x433   : > { %5250 = vset.pattern.permute.xlu1 %v5487_v33 }
 0x434   : > { %1865 = vperm.xlu1 %5250, %v5758_v13  }
 0x438   : > { %5252 = vset.pattern.permute.xlu1 %v5500_v49 }
 0x439   : > { %2245 = vperm.xlu1 %5252, %v5758_v13  }
 0x43d   : > { %5253 = vset.pattern.permute.xlu1 %v5488_v34 }
 0x43e   : > { %2435 = vperm.xlu1 %5253, %v5758_v13  }
 0x442   : > { %5255 = vset.pattern.permute.xlu1 %v5501_v50 }
 0x443   : > { %2815 = vperm.xlu1 %5255, %v5758_v13  }
 0x447   : > { %5256 = vset.pattern.permute.xlu1 %v5489_v30 }
 0x448   : > { %3005 = vperm.xlu1 %5256, %v5758_v13  }
 0x44c   : > { %5258 = vset.pattern.permute.xlu1 %v5502_v51 }
 0x44d   : > { %3385 = vperm.xlu1 %5258, %v5758_v13  }
 0x451   : > { %5259 = vset.pattern.permute.xlu1 %v5490_v35  ;;  %v3585_v35 = vrot.slane %v694_v15, %v1020_v53 }
 0x452   : > { %3575 = vperm.xlu1 %5259, %v5758_v13  }
 0x456   : > { %5261 = vset.pattern.permute.xlu1 %v5503_v52 }
 0x457   : > { %3955 = vperm.xlu1 %5261, %v5758_v13  }
 0x458   : > { %v1064_v56 = vpop.f32.mrb[8].mxu1 }
 0x459   : > { %v1065_v57 = vadd.f32 %v1064_v56, %v1021_v54  ;;  %v4759_v58 = vpop.f32.mrb[9].mxu1 }
 0x45a   : > { %v1067_v59 = vpop.f32.mrb[10].mxu1 }
 0x45b   : > { %v1073_v61 = vmul.f32 1.442695, %v1065_v57  ;;  %v1068_v63 = vadd.f32 %v1067_v59, %v1021_v54  ;;  %5263 = vset.pattern.permute.xlu1 %v5497_v45  ;;  %v4760_v0 = vpop.f32.mrb[11].mxu1  ;;  %vm1071_vm14 = vcmp.gt.f32.partialorder %v1065_v57, 20.0  ;;  %v3775_v45 = vrot.slane %v694_v15, %v5859_v14 }
 0x45c   : > { %4145 = vperm.xlu1 %5263, %v5758_v13  }
 0x45d   : > { %5288 = vpow2.f32 %v1073_v61  ;;  %v1075_v1 = vmul.f32 1.442695, %v1068_v63  ;;  %vm1072_vm15 = vcmp.gt.f32.partialorder %v1068_v63, 20.0 }
 0x45f   : > { %5290 = vpow2.f32 %v1075_v1 }
 0x467   : > { %v5289_v41 = vpop.eup %5288 }
 0x468   : > { %v1077_v4 = vadd.f32 1.0, %v5289_v41 }
 0x469   : > { %v5291_v5 = vpop.eup %5290 }
 0x46a   : > { %5292 = vlog2.f32 %v1077_v4  ;;  %v1078_v8 = vadd.f32 1.0, %v5291_v5 }
 0x46c   : > { %5294 = vlog2.f32 %v1078_v8 }
 0x474   : > { %v5293_v10 = vpop.eup %5292 }
 0x475   : > { %v1080_v13 = vmul.f32 0.6931472, %v5293_v10 }
 0x476   : > { %v5295_v19 = vpop.eup %5294 }
 0x477   : > { %v5867_v23 = vsel %vm1071_vm14, %v1065_v57, %v1080_v13  ;;  %v1082_v26 = vmul.f32 0.6931472, %v5295_v19  ;;  %v5896_v57 = vld [vmem:[%s6356_s4 + $0x8] sm:$0xff] }
 0x478   : > { %v1101_v34 = vmul.f32 %v1100_v11, %v5867_v23  ;;  %v1306_v30 = vmul.f32 %v1305_v12, %v5867_v23  ;;  %v1496_v37 = vmul.f32 %v1495_v16, %v5867_v23  ;;  %v1686_v3 = vmul.f32 %v1685_v17, %v5867_v23 }
 0x479   : > { %v5874_v33 = vsel %vm1072_vm15, %v1068_v63, %v1082_v26  ;;  %v1876_v40 = vmul.f32 %v1875_v18, %v5867_v23  ;;  %v2066_v44 = vmul.f32 %v2065_v20, %v5867_v23  ;;  %v2256_v53 = vmul.f32 %v2255_v21, %v5867_v23 }
 0x47a   : > { %v1102_v36 = vmul.f32 %v1100_v11, %v5874_v33  ;;  %v1307_v2 = vmul.f32 %v1305_v12, %v5874_v33  ;;  %v1497_v60 = vmul.f32 %v1495_v16, %v5874_v33  ;;  %v1687_v25 = vmul.f32 %v1685_v17, %v5874_v33 }
 0x47b   : > { %v1877_v55 = vmul.f32 %v1875_v18, %v5874_v33  ;;  %v2067_v52 = vmul.f32 %v2065_v20, %v5874_v33  ;;  %v2257_v54 = vmul.f32 %v2255_v21, %v5874_v33  ;;  %v2446_v56 = vmul.f32 %v2445_v22, %v5867_v23 }
 0x47c   : > { %v5003_v43 = vpack.c.bf16 %v1102_v36, %v1101_v34  ;;  %v5011_v47 = vpack.c.bf16 %v1307_v2, %v1306_v30  ;;  %v5019_v49 = vpack.c.bf16 %v1497_v60, %v1496_v37  ;;  %v5027_v50 = vpack.c.bf16 %v1687_v25, %v1686_v3 }
 0x47d   : > { %v5035_v51 = vpack.c.bf16 %v1877_v55, %v1876_v40  ;;  %v2447_v39 = vmul.f32 %v2445_v22, %v5874_v33  ;;  %v2636_v58 = vmul.f32 %v2635_v38, %v5867_v23  ;;  %v2637_v59 = vmul.f32 %v2635_v38, %v5874_v33 }
 0x47e   : > { %5004 = vmatprep.subr.bf16.mxu1 %v5003_v43  ;;  %5012 = vmatprep.subr.bf16.mxu0 %v5011_v47  ;;  %v5043_v61 = vpack.c.bf16 %v2067_v52, %v2066_v44  ;;  %v5051_v63 = vpack.c.bf16 %v2257_v54, %v2256_v53  ;;  %v2826_v0 = vmul.f32 %v2825_v27, %v5867_v23 }
 0x47f   : > { %5006 = vmatpush3.bf16.msra.mxu1 %v5003_v43  ;;  %5014 = vmatpush3.bf16.msra.mxu0 %v5011_v47  ;;  %v2827_v1 = vmul.f32 %v2825_v27, %v5874_v33  ;;  %v5059_v41 = vpack.c.bf16 %v2447_v39, %v2446_v56  ;;  %v5067_v4 = vpack.c.bf16 %v2637_v59, %v2636_v58 }
 0x480   : > { %5020 = vmatprep.subr.bf16.mxu0 %v5019_v49  ;;  %v3016_v5 = vmul.f32 %v3015_v28, %v5867_v23  ;;  %v3017_v8 = vmul.f32 %v3015_v28, %v5874_v33  ;;  %v3206_v10 = vmul.f32 %v3205_v29, %v5867_v23  ;;  %v3207_v11 = vmul.f32 %v3205_v29, %v5874_v33  ;;  %v5981_v29 = vld [vmem:[%s6355_s3] sm:$0xff] }
 0x481   : > { %v5075_v9 = vpack.c.bf16 %v2827_v1, %v2826_v0  ;;  %v3396_v12 = vmul.f32 %v3395_v32, %v5867_v23  ;;  %v3397_v13 = vmul.f32 %v3395_v32, %v5874_v33  ;;  %v3586_v16 = vmul.f32 %v3585_v35, %v5867_v23  ;;  %v1192_v32 = vpop.permute.xlu1 %1191 }
 0x482   : > { %4766 = vmatmul.mubr.msk.f32.vlgmr.msra.gmra.mrb[12].mxu1 %vm1103_vm13, %v5896_v57  ;;  %4780 = vmatmul.mubr.msk.f32.vlgmr.msra.gmra.mrb[4].mxu0 %vm1103_vm13, %v5896_v57  ;;  %v5083_v15 = vpack.c.bf16 %v3017_v8, %v3016_v5  ;;  %v3587_v17 = vmul.f32 %v3585_v35, %v5874_v33  ;;  %v5091_v18 = vpack.c.bf16 %v3207_v11, %v3206_v10 }
 0x483   : > { %5022 = vmatpush3.bf16.msra.mxu0 %v5019_v49  ;;  %4793 = vmatprep.mubr.msk.f32.mxu0 %vm1103_vm13, %v5822_v48  ;;  %v3776_v19 = vmul.f32 %v3775_v45, %v5867_v23  ;;  %v3777_v20 = vmul.f32 %v3775_v45, %v5874_v33  ;;  %v5099_v21 = vpack.c.bf16 %v3397_v13, %v3396_v12 }
 0x484   : > { %5028 = vmatprep.subr.bf16.mxu0 %v5027_v50  ;;  %v5107_v22 = vpack.c.bf16 %v3587_v17, %v3586_v16  ;;  %v3966_v26 = vmul.f32 %v3965_v46, %v5867_v23  ;;  %v3967_v38 = vmul.f32 %v3965_v46, %v5874_v33  ;;  %4772 = vmatprep.mubr.msk.f32.mxu1 %vm1103_vm13, %v5981_v29 }
 0x485   : > { %v5115_v27 = vpack.c.bf16 %v3777_v20, %v3776_v19  ;;  %v1389_v34 = vpop.permute.xlu1 %1388  ;;  %v6005_v39 = vmul.f32 %v5874_v33, %v5744_v7  ;;  %v6009_v59 = vmul.f32 %v5867_v23, %v5742_v6 }
 0x486   : > { %4794 = vmatmul.mubr.msk.f32.vlgmr.msra.gmra.mrb[6].mxu0 %vm1103_vm13, %v5896_v57  ;;  %v5123_v28 = vpack.c.bf16 %v3967_v38, %v3966_v26 }
 0x487   : > { %5030 = vmatpush3.bf16.msra.mxu0 %v5027_v50  ;;  %4807 = vmatprep.mubr.msk.f32.mxu0 %vm1103_vm13, %v5822_v48  ;;  %v1199_v23 = vmul.f32 %v1192_v32, %v6009_v59  ;;  %v1395_v13 = vmul.f32 %v1389_v34, %v6009_v59 }
 0x488   : > { %5036 = vmatprep.subr.bf16.mxu0 %v5035_v51 }
 0x489   : > { %v5985_v30 = vpop.permute.xlu1 %1578 }
 0x48a   : > { %4808 = vmatmul.mubr.msk.f32.vlgmr.msra.gmra.mrb[8].mxu0 %vm1103_vm13, %v5896_v57  ;;  %v1585_v32 = vmul.f32 %v5985_v30, %v6009_v59 }
 0x48b   : > { %5038 = vmatpush3.bf16.msra.mxu0 %v5035_v51  ;;  %4821 = vmatprep.mubr.msk.f32.mxu0 %vm1103_vm13, %v5822_v48 }
 0x48c   : > { %5044 = vmatprep.subr.bf16.mxu0 %v5043_v61 }
 0x48e   : > { %4822 = vmatmul.mubr.msk.f32.vlgmr.msra.gmra.mrb[10].mxu0 %vm1103_vm13, %v5896_v57 }
 0x48f   : > { %5046 = vmatpush3.bf16.msra.mxu0 %v5043_v61  ;;  %4835 = vmatprep.mubr.msk.f32.mxu0 %vm1103_vm13, %v5822_v48 }
 0x490   : > { %5052 = vmatprep.subr.bf16.mxu0 %v5051_v63 }
 0x492   : > { %4836 = vmatmul.mubr.msk.f32.vlgmr.msra.gmra.mrb[12].mxu0 %vm1103_vm13, %v5896_v57 }
 0x493   : > { %5054 = vmatpush3.bf16.msra.mxu0 %v5051_v63  ;;  %4849 = vmatprep.mubr.msk.f32.mxu0 %vm1103_vm13, %v5822_v48 }
 0x494   : > { %5060 = vmatprep.subr.bf16.mxu0 %v5059_v41 }
 0x496   : > { %4850 = vmatmul.mubr.msk.f32.vlgmr.msra.gmra.mrb[14].mxu0 %vm1103_vm13, %v5896_v57 }
 0x497   : > { %5062 = vmatpush3.bf16.msra.mxu0 %v5059_v41  ;;  %4863 = vmatprep.mubr.msk.f32.mxu0 %vm1103_vm13, %v5822_v48 }
 0x498   : > { %5068 = vmatprep.subr.bf16.mxu0 %v5067_v4 }
 0x49a   : > { %4864 = vmatmul.mubr.msk.f32.vlgmr.msra.gmra.mrb[16].mxu0 %vm1103_vm13, %v5896_v57 }
 0x49b   : > { %5070 = vmatpush3.bf16.msra.mxu0 %v5067_v4  ;;  %4877 = vmatprep.mubr.msk.f32.mxu0 %vm1103_vm13, %v5822_v48 }
 0x49c   : > { %5076 = vmatprep.subr.bf16.mxu0 %v5075_v9 }
 0x49e   : > { %4878 = vmatmul.mubr.msk.f32.vlgmr.msra.gmra.mrb[18].mxu0 %vm1103_vm13, %v5896_v57 }
 0x49f   : > { %5078 = vmatpush3.bf16.msra.mxu0 %v5075_v9  ;;  %4891 = vmatprep.mubr.msk.f32.mxu0 %vm1103_vm13, %v5822_v48 }
 0x4a0   : > { %5084 = vmatprep.subr.bf16.mxu0 %v5083_v15 }
 0x4a2   : > { %4892 = vmatmul.mubr.msk.f32.vlgmr.msra.gmra.mrb[20].mxu0 %vm1103_vm13, %v5896_v57 }
 0x4a3   : > { %5086 = vmatpush3.bf16.msra.mxu0 %v5083_v15  ;;  %4905 = vmatprep.mubr.msk.f32.mxu0 %vm1103_vm13, %v5822_v48 }
 0x4a4   : > { %5092 = vmatprep.subr.bf16.mxu0 %v5091_v18 }
 0x4a6   : > { %4906 = vmatmul.mubr.msk.f32.vlgmr.msra.gmra.mrb[22].mxu0 %vm1103_vm13, %v5896_v57 }
 0x4a7   : > { %5094 = vmatpush3.bf16.msra.mxu0 %v5091_v18  ;;  %4919 = vmatprep.mubr.msk.f32.mxu0 %vm1103_vm13, %v5822_v48  ;;  %v1959_v18 = vpop.permute.xlu0 %1958 }
 0x4a8   : > { %5100 = vmatprep.subr.bf16.mxu0 %v5099_v21 }
 0x4aa   : > { %4920 = vmatmul.mubr.msk.f32.vlgmr.msra.gmra.mrb[24].mxu0 %vm1103_vm13, %v5896_v57 }
 0x4ab   : > { %5102 = vmatpush3.bf16.msra.mxu0 %v5099_v21  ;;  %4933 = vmatprep.mubr.msk.f32.mxu0 %vm1103_vm13, %v5822_v48 }
 0x4ac   : > { %5108 = vmatprep.subr.bf16.mxu0 %v5107_v22 }
 0x4ae   : > { %4934 = vmatmul.mubr.msk.f32.vlgmr.msra.gmra.mrb[26].mxu0 %vm1103_vm13, %v5896_v57 }
 0x4af   : > { %5110 = vmatpush3.bf16.msra.mxu0 %v5107_v22  ;;  %4947 = vmatprep.mubr.msk.f32.mxu0 %vm1103_vm13, %v5822_v48 }
 0x4b0   : > { %5116 = vmatprep.subr.bf16.mxu0 %v5115_v27 }
 0x4b2   : > { %4948 = vmatmul.mubr.msk.f32.vlgmr.msra.gmra.mrb[28].mxu0 %vm1103_vm13, %v5896_v57 }
 0x4b3   : > { %5118 = vmatpush3.bf16.msra.mxu0 %v5115_v27  ;;  %4961 = vmatprep.mubr.msk.f32.mxu0 %vm1103_vm13, %v5822_v48 }
 0x4b4   : > { %5124 = vmatprep.subr.bf16.mxu0 %v5123_v28 }
 0x4b6   : > { %4962 = vmatmul.mubr.msk.f32.vlgmr.msra.gmra.mrb[30].mxu0 %vm1103_vm13, %v5896_v57 }
 0x4b7   : > { %5126 = vmatpush3.bf16.msra.mxu0 %v5123_v28  ;;  %4975 = vmatprep.mubr.msk.f32.mxu0 %vm1103_vm13, %v5822_v48  ;;  %v5987_v48 = vpop.permute.xlu1 %1768 }
 0x4b8   : > { %4985 = vmatprep.subr.bf16.mxu0 %v5468_v24 }
 0x4ba   : > { %4976 = vmatmul.mubr.msk.f32.vlgmr.msra.gmra.mrb[32].mxu0 %vm1103_vm13, %v5896_v57 }
 0x4bb   : > { %4993 = vmatprep.mubr.msk.bf16.mxu0 %vm5469_vm6, %v5468_v24  ;;  %v5989_v35 = vpop.permute.xlu1 %2148 }
 0x4bf   : > { %v5991_v36 = vpop.permute.xlu1 %2338 }
 0x4c3   : > { %v5993_v37 = vpop.permute.xlu1 %2718 }
 0x4c7   : > { %v5995_v3 = vpop.permute.xlu1 %2908 }
 0x4cb   : > { %v1197_v40 = vpop.permute.xlu1 %1196 }
 0x4cc   : > { %v1200_v1 = vmul.f32 %v1197_v40, %v6005_v39 }
 0x4cf   : > { %v1393_v2 = vpop.permute.xlu1 %1392 }
 0x4d0   : > { %v1396_v33 = vmul.f32 %v1393_v2, %v6005_v39 }
 0x4d3   : > { %v1583_v60 = vpop.permute.xlu1 %1582 }
 0x4d4   : > { %v1586_v22 = vmul.f32 %v1583_v60, %v6005_v39 }
 0x4d7   : > { %v5997_v25 = vpop.permute.xlu1 %1772 }
 0x4d8   : > { %v1776_v30 = vmul.f32 %v5997_v25, %v6005_v39 }
 0x4db   : > { %v5999_v46 = vpop.permute.xlu1 %1962 }
 0x4df   : > { %v6001_v57 = vpop.permute.xlu1 %3288 }
 0x4e3   : > { %v6017_v8 = vpop.permute.xlu1 %2342 }
 0x555   : > { %v4767_v55 = vpop.f32.mrb[12].mxu1  ;;  %v4781_v44 = vpop.f32.mrb[4].mxu0 }
 0x556   : > { %v1187_v43 = vmul.f32 1.442695, %v4767_v55  ;;  %v1176_v45 = vpop.f32.mrb[13].mxu1  ;;  %v1385_v47 = vmul.f32 1.442695, %v4781_v44  ;;  %v1374_v50 = vpop.f32.mrb[5].mxu0 }
 0x557   : > { %v1185_v49 = vmul.f32 1.442695, %v1176_v45  ;;  %v1383_v51 = vmul.f32 1.442695, %v1374_v50  ;;  %v6043_v45 = vld [vmem:[%s6355_s3 + $0x8] sm:$0xff] }
 0x558   : > { %5296 = vpow2.f32 %v1187_v43  ;;  %v6037_v43 = vpop.permute.xlu1 %2532 }
 0x559   : > { %5298 = vpow2.f32 %v1385_v47  ;;  %v4795_v52 = vpop.f32.mrb[6].mxu0 }
 0x55a   : > { %5300 = vpow2.f32 %v1185_v49  ;;  %v1575_v53 = vmul.f32 1.442695, %v4795_v52  ;;  %v1564_v54 = vpop.f32.mrb[7].mxu0  ;;  %v6049_v49 = vpop.permute.xlu0 %2528 }
 0x55b   : > { %5302 = vpow2.f32 %v1383_v51  ;;  %v1573_v56 = vmul.f32 1.442695, %v1564_v54 }
 0x55c   : > { %5304 = vpow2.f32 %v1575_v53  ;;  %v1775_v53 = vmul.f32 %v5987_v48, %v6009_v59  ;;  %v1966_v48 = vmul.f32 %v5999_v46, %v6005_v39 }
 0x55d   : > { %5306 = vpow2.f32 %v1573_v56  ;;  %v4809_v58 = vpop.f32.mrb[8].mxu0 }
 0x55e   : > { %v1765_v61 = vmul.f32 1.442695, %v4809_v58  ;;  %v1754_v63 = vpop.f32.mrb[9].mxu0 }
 0x55f   : > { %v1763_v0 = vmul.f32 1.442695, %v1754_v63 }
 0x560   : > { %5308 = vpow2.f32 %v1765_v61 }
 0x561   : > { %5310 = vpow2.f32 %v1763_v0  ;;  %v4823_v4 = vpop.f32.mrb[10].mxu0  ;;  %v6065_v0 = vpop.permute.xlu1 %3478 }
 0x562   : > { %v6012_v41 = vpop.eup %5296  ;;  %v1955_v9 = vmul.f32 1.442695, %v4823_v4  ;;  %v1944_v10 = vpop.f32.mrb[11].mxu0 }
 0x563   : > { %v6015_v5 = vpop.eup %5298  ;;  %v1202_v11 = vmul.f32 %v6012_v41, %v1200_v1  ;;  %v1953_v15 = vmul.f32 1.442695, %v1944_v10 }
 0x564   : > { %v6021_v12 = vpop.eup %5300  ;;  %v1398_v16 = vmul.f32 %v6015_v5, %v1396_v33  ;;  %5312 = vpow2.f32 %v1955_v9  ;;  %v1965_v9 = vmul.f32 %v1959_v18, %v6009_v59 }
 0x565   : > { %v6025_v17 = vpop.eup %5302  ;;  %v1201_v19 = vmul.f32 %v6021_v12, %v1199_v23  ;;  %5314 = vpow2.f32 %v1953_v15  ;;  %v4837_v20 = vpop.f32.mrb[12].mxu0 }
 0x566   : > { %v1397_v21 = vmul.f32 %v6025_v17, %v1395_v13  ;;  %v6030_v26 = vpop.eup %5304  ;;  %v2145_v38 = vmul.f32 1.442695, %v4837_v20  ;;  %v2134_v27 = vpop.f32.mrb[13].mxu0 }
 0x567   : > { %v5007_v28 = vpack.c.bf16 %v1202_v11, %v1201_v19  ;;  %v6034_v34 = vpop.eup %5306  ;;  %v2143_v40 = vmul.f32 1.442695, %v2134_v27  ;;  %v1588_v55 = vmul.f32 %v6030_v26, %v1586_v22  ;;  %v2153_v15 = vpop.permute.xlu0 %2152  ;;  %v2155_v22 = vmul.f32 %v5989_v35, %v6009_v59 }
 0x568   : > { %v5015_v2 = vpack.c.bf16 %v1398_v16, %v1397_v21  ;;  %5316 = vpow2.f32 %v2145_v38  ;;  %v1587_v60 = vmul.f32 %v6034_v34, %v1585_v32  ;;  %v2156_v16 = vmul.f32 %v2153_v15, %v6005_v39  ;;  %v6084_v32 = vpop.permute.xlu1 %2912 }
 0x569   : > { %5008 = vmatprep.subr.bf16.mxu1 %v5007_v28  ;;  %5318 = vpow2.f32 %v2143_v40  ;;  %v4851_v44 = vpop.f32.mrb[14].mxu0  ;;  %v2346_v35 = vmul.f32 %v6017_v8, %v6005_v39 }
 0x56a   : > { %5010 = vmatpush3.bf16.msra.mxu1 %v5007_v28  ;;  %v6047_v47 = vpop.eup %5308  ;;  %v2335_v50 = vmul.f32 1.442695, %v4851_v44  ;;  %v2324_v51 = vpop.f32.mrb[15].mxu0  ;;  %v5023_v52 = vpack.c.bf16 %v1588_v55, %v1587_v60 }
 0x56b   : > { %5016 = vmatprep.subr.bf16.mxu1 %v5015_v2  ;;  %v6053_v54 = vpop.eup %5310  ;;  %v2333_v56 = vmul.f32 1.442695, %v2324_v51  ;;  %v1778_v58 = vmul.f32 %v6047_v47, %v1776_v30  ;;  %v6095_v60 = vpop.permute.xlu0 %3098  ;;  %v2345_v51 = vmul.f32 %v5991_v36, %v6009_v59  ;;  %v2536_v36 = vmul.f32 %v6037_v43, %v6005_v39 }
 0x56c   : > { %5320 = vpow2.f32 %v2335_v50  ;;  %v1777_v25 = vmul.f32 %v6053_v54, %v1775_v53 }
 0x56d   : > { %4773 = vmatmul.mubr.msk.f32.vlgmr.msra.gmra.mrb[14].mxu1 %vm1103_vm13, %v6043_v45  ;;  %5322 = vpow2.f32 %v2333_v56  ;;  %v4865_v61 = vpop.f32.mrb[16].mxu0 }
 0x56e   : > { %5018 = vmatpush3.bf16.msra.mxu1 %v5015_v2  ;;  %4786 = vmatprep.mubr.msk.f32.mxu1 %vm1103_vm13, %v5981_v29  ;;  %v6063_v63 = vpop.eup %5312  ;;  %v2525_v1 = vmul.f32 1.442695, %v4865_v61  ;;  %v2514_v4 = vpop.f32.mrb[17].mxu0  ;;  %v5031_v33 = vpack.c.bf16 %v1778_v58, %v1777_v25 }
 0x56f   : > { %5024 = vmatprep.subr.bf16.mxu1 %v5023_v52  ;;  %v6068_v10 = vpop.eup %5314  ;;  %v2523_v23 = vmul.f32 1.442695, %v2514_v4  ;;  %v1968_v11 = vmul.f32 %v6063_v63, %v1966_v48  ;;  %v3103_v61 = vpop.permute.xlu1 %3102 }
 0x570   : > { %5324 = vpow2.f32 %v2525_v1  ;;  %v1967_v46 = vmul.f32 %v6068_v10, %v1965_v9  ;;  %v2723_v15 = vpop.permute.xlu0 %2722 }
 0x571   : > { %4787 = vmatmul.mubr.msk.f32.vlgmr.msra.gmra.mrb[16].mxu1 %vm1103_vm13, %v6043_v45  ;;  %5326 = vpow2.f32 %v2523_v23  ;;  %v4879_v13 = vpop.f32.mrb[18].mxu0 }
 0x572   : > { %5026 = vmatpush3.bf16.msra.mxu1 %v5023_v52  ;;  %4800 = vmatprep.mubr.msk.f32.mxu1 %vm1103_vm13, %v5981_v29  ;;  %v6077_v18 = vpop.eup %5316  ;;  %v2715_v19 = vmul.f32 1.442695, %v4879_v13  ;;  %v2704_v20 = vpop.f32.mrb[19].mxu0  ;;  %v5039_v21 = vpack.c.bf16 %v1968_v11, %v1967_v46 }
 0x573   : > { %5032 = vmatprep.subr.bf16.mxu1 %v5031_v33  ;;  %v6081_v38 = vpop.eup %5318  ;;  %v2713_v27 = vmul.f32 1.442695, %v2704_v20  ;;  %v2158_v28 = vmul.f32 %v6077_v18, %v2156_v16 }
 0x574   : > { %5328 = vpow2.f32 %v2715_v19  ;;  %v2157_v40 = vmul.f32 %v6081_v38, %v2155_v22 }
 0x575   : > { %4801 = vmatmul.mubr.msk.f32.vlgmr.msra.gmra.mrb[18].mxu1 %vm1103_vm13, %v6043_v45  ;;  %5330 = vpow2.f32 %v2713_v27  ;;  %v4893_v2 = vpop.f32.mrb[20].mxu0 }
 0x576   : > { %5034 = vmatpush3.bf16.msra.mxu1 %v5031_v33  ;;  %4814 = vmatprep.mubr.msk.f32.mxu1 %vm1103_vm13, %v5981_v29  ;;  %v6093_v55 = vpop.eup %5320  ;;  %v2905_v44 = vmul.f32 1.442695, %v4893_v2  ;;  %v2894_v30 = vpop.f32.mrb[21].mxu0  ;;  %v5047_v50 = vpack.c.bf16 %v2158_v28, %v2157_v40  ;;  %v2535_v33 = vmul.f32 %v6049_v49, %v6009_v59  ;;  %v2726_v49 = vmul.f32 %v2723_v15, %v6005_v39 }
 0x577   : > { %5040 = vmatprep.subr.bf16.mxu1 %v5039_v21  ;;  %v6099_v52 = vpop.eup %5322  ;;  %v2903_v53 = vmul.f32 1.442695, %v2894_v30  ;;  %v2348_v56 = vmul.f32 %v6093_v55, %v2346_v35  ;;  %v6129_v40 = vpop.permute.xlu1 %3858 }
 0x578   : > { %5332 = vpow2.f32 %v2905_v44  ;;  %v2347_v8 = vmul.f32 %v6099_v52, %v2345_v51 }
 0x579   : > { %4815 = vmatmul.mubr.msk.f32.vlgmr.msra.gmra.mrb[20].mxu1 %vm1103_vm13, %v6043_v45  ;;  %5334 = vpow2.f32 %v2903_v53  ;;  %v4907_v58 = vpop.f32.mrb[22].mxu0  ;;  %v2915_v53 = vmul.f32 %v5995_v3, %v6009_v59 }
 0x57a   : > { %5042 = vmatpush3.bf16.msra.mxu1 %v5039_v21  ;;  %4828 = vmatprep.mubr.msk.f32.mxu1 %vm1103_vm13, %v5981_v29  ;;  %v6109_v25 = vpop.eup %5324  ;;  %v3095_v48 = vmul.f32 1.442695, %v4907_v58  ;;  %v3084_v1 = vpop.f32.mrb[23].mxu0  ;;  %v5055_v4 = vpack.c.bf16 %v2348_v56, %v2347_v8  ;;  %v2725_v21 = vmul.f32 %v5993_v37, %v6009_v59  ;;  %v2916_v37 = vmul.f32 %v6084_v32, %v6005_v39 }
 0x57b   : > { %5048 = vmatprep.subr.bf16.mxu1 %v5047_v50  ;;  %v6113_v9 = vpop.eup %5326  ;;  %v3093_v23 = vmul.f32 1.442695, %v3084_v1  ;;  %v2538_v11 = vmul.f32 %v6109_v25, %v2536_v36  ;;  %v3483_v1 = vpop.permute.xlu1 %3482 }
 0x57c   : > { %5336 = vpow2.f32 %v3095_v48  ;;  %v2537_v43 = vmul.f32 %v6113_v9, %v2535_v33  ;;  %v3106_v48 = vmul.f32 %v3103_v61, %v6005_v39 }
 0x57d   : > { %4829 = vmatmul.mubr.msk.f32.vlgmr.msra.gmra.mrb[22].mxu1 %vm1103_vm13, %v6043_v45  ;;  %5338 = vpow2.f32 %v3093_v23  ;;  %v4921_v46 = vpop.f32.mrb[24].mxu0 }
 0x57e   : > { %5050 = vmatpush3.bf16.msra.mxu1 %v5047_v50  ;;  %4842 = vmatprep.mubr.msk.f32.mxu1 %vm1103_vm13, %v5981_v29  ;;  %v6122_v13 = vpop.eup %5328  ;;  %v3285_v16 = vmul.f32 1.442695, %v4921_v46  ;;  %v3274_v19 = vpop.f32.mrb[25].mxu0  ;;  %v5063_v20 = vpack.c.bf16 %v2538_v11, %v2537_v43  ;;  %v3105_v11 = vmul.f32 %v6095_v60, %v6009_v59 }
 0x57f   : > { %5056 = vmatprep.subr.bf16.mxu1 %v5055_v4  ;;  %v6126_v22 = vpop.eup %5330  ;;  %v3283_v27 = vmul.f32 1.442695, %v3274_v19  ;;  %v2728_v28 = vmul.f32 %v6122_v13, %v2726_v49  ;;  %v3293_v49 = vpop.permute.xlu0 %3292 }
 0x580   : > { %5340 = vpow2.f32 %v3285_v16  ;;  %v2727_v2 = vmul.f32 %v6126_v22, %v2725_v21  ;;  %v3296_v60 = vmul.f32 %v3293_v49, %v6005_v39 }
 0x581   : > { %4843 = vmatmul.mubr.msk.f32.vlgmr.msra.gmra.mrb[24].mxu1 %vm1103_vm13, %v6043_v45  ;;  %5342 = vpow2.f32 %v3283_v27  ;;  %v4935_v35 = vpop.f32.mrb[26].mxu0 }
 0x582   : > { %5058 = vmatpush3.bf16.msra.mxu1 %v5055_v4  ;;  %4856 = vmatprep.mubr.msk.f32.mxu1 %vm1103_vm13, %v5981_v29  ;;  %v6138_v44 = vpop.eup %5332  ;;  %v3475_v30 = vmul.f32 1.442695, %v4935_v35  ;;  %v3464_v50 = vpop.f32.mrb[27].mxu0  ;;  %v5071_v51 = vpack.c.bf16 %v2728_v28, %v2727_v2  ;;  %v3295_v28 = vmul.f32 %v6001_v57, %v6009_v59 }
 0x583   : > { %5064 = vmatprep.subr.bf16.mxu1 %v5063_v20  ;;  %v6142_v56 = vpop.eup %5334  ;;  %v3473_v8 = vmul.f32 1.442695, %v3464_v50  ;;  %v2918_v58 = vmul.f32 %v6138_v44, %v2916_v37 }
 0x584   : > { %5344 = vpow2.f32 %v3475_v30  ;;  %v2917_v32 = vmul.f32 %v6142_v56, %v2915_v53  ;;  %v3673_v30 = vpop.permute.xlu1 %3672 }
 0x585   : > { %4857 = vmatmul.mubr.msk.f32.vlgmr.msra.gmra.mrb[26].mxu1 %vm1103_vm13, %v6043_v45  ;;  %5346 = vpow2.f32 %v3473_v8  ;;  %v4949_v36 = vpop.f32.mrb[28].mxu0  ;;  %v3669_v8 = vpop.permute.xlu0 %3668 }
 0x586   : > { %5066 = vmatpush3.bf16.msra.mxu1 %v5063_v20  ;;  %4870 = vmatprep.mubr.msk.f32.mxu1 %vm1103_vm13, %v5981_v29  ;;  %v6151_v3 = vpop.eup %5336  ;;  %v3665_v4 = vmul.f32 1.442695, %v4949_v36  ;;  %v3654_v33 = vpop.f32.mrb[29].mxu0  ;;  %v5079_v23 = vpack.c.bf16 %v2918_v58, %v2917_v32  ;;  %v3675_v49 = vmul.f32 %v3669_v8, %v6009_v59 }
 0x587   : > { %5072 = vmatprep.subr.bf16.mxu1 %v5071_v51  ;;  %v6155_v15 = vpop.eup %5338  ;;  %v3663_v43 = vmul.f32 1.442695, %v3654_v33  ;;  %v3108_v46 = vmul.f32 %v6151_v3, %v3106_v48  ;;  %v3485_v48 = vmul.f32 %v6065_v0, %v6009_v59 }
 0x588   : > { %5348 = vpow2.f32 %v3665_v4  ;;  %v3107_v61 = vmul.f32 %v6155_v15, %v3105_v11  ;;  %v3676_v11 = vmul.f32 %v3673_v30, %v6005_v39  ;;  %v4049_v0 = vpop.permute.xlu1 %4048 }
 0x589   : > { %4871 = vmatmul.mubr.msk.f32.vlgmr.msra.gmra.mrb[28].mxu1 %vm1103_vm13, %v6043_v45  ;;  %5350 = vpow2.f32 %v3663_v43  ;;  %v4963_v16 = vpop.f32.mrb[30].mxu0 }
 0x58a   : > { %5074 = vmatpush3.bf16.msra.mxu1 %v5071_v51  ;;  %4884 = vmatprep.mubr.msk.f32.mxu1 %vm1103_vm13, %v5981_v29  ;;  %v6164_v19 = vpop.eup %5340  ;;  %v3855_v20 = vmul.f32 1.442695, %v4963_v16  ;;  %v3844_v21 = vpop.f32.mrb[31].mxu0  ;;  %v5087_v27 = vpack.c.bf16 %v3108_v46, %v3107_v61  ;;  %v3486_v51 = vmul.f32 %v3483_v1, %v6005_v39 }
 0x58b   : > { %5080 = vmatprep.subr.bf16.mxu1 %v5079_v23  ;;  %v6168_v2 = vpop.eup %5342  ;;  %v3853_v35 = vmul.f32 1.442695, %v3844_v21  ;;  %v3298_v37 = vmul.f32 %v6164_v19, %v3296_v60  ;;  %v3863_v60 = vpop.permute.xlu0 %3862 }
 0x58c   : > { %5352 = vpow2.f32 %v3855_v20  ;;  %v3297_v50 = vmul.f32 %v6168_v2, %v3295_v28  ;;  %v3866_v21 = vmul.f32 %v3863_v60, %v6005_v39  ;;  %v3865_v28 = vmul.f32 %v6129_v40, %v6009_v59 }
 0x58d   : > { %4885 = vmatmul.mubr.msk.f32.vlgmr.msra.gmra.mrb[30].mxu1 %vm1103_vm13, %v6043_v45  ;;  %5354 = vpow2.f32 %v3853_v35  ;;  %v4977_v53 = vpop.f32.mrb[32].mxu0  ;;  %v4055_v40 = vmul.f32 %v4049_v0, %v6009_v59  ;;  %v5275_v0 = vld [vmem:[%s5644_s25 + $0x18] sm:$0xff]  }
 0x58e   : > { %5082 = vmatpush3.bf16.msra.mxu1 %v5079_v23  ;;  %4898 = vmatprep.mubr.msk.f32.mxu1 %vm1103_vm13, %v5981_v29  ;;  %v6177_v57 = vpop.eup %5344  ;;  %v4045_v58 = vmul.f32 1.442695, %v4977_v53  ;;  %v4034_v32 = vpop.f32.mrb[33].mxu0  ;;  %v5095_v36 = vpack.c.bf16 %v3298_v37, %v3297_v50 }
 0x58f   : > { %5088 = vmatprep.subr.bf16.mxu1 %v5087_v27  ;;  %v6181_v4 = vpop.eup %5346  ;;  %v4043_v33 = vmul.f32 1.442695, %v4034_v32  ;;  %v3488_v1 = vmul.f32 %v6177_v57, %v3486_v51  ;;  %v4053_v50 = vpop.permute.xlu1 %4052 }
 0x590   : > { %5356 = vpow2.f32 %v4045_v58  ;;  %v3487_v23 = vmul.f32 %v6181_v4, %v3485_v48  ;;  %v4056_v53 = vmul.f32 %v4053_v50, %v6005_v39  ;;  %v5272_v48 = vld [vmem:[%s5644_s25] sm:$0xff]   ;;  %v1475_v50 = vadd.f32 1e-12, %v6015_v5 }
 0x591   : > { %4899 = vmatmul.mubr.msk.f32.vlgmr.msra.gmra.mrb[32].mxu1 %vm1103_vm13, %v6043_v45  ;;  %5358 = vpow2.f32 %v4043_v33  ;;  %4986 = vmatpush3.bf16.msra.mxu0 %v5272_v48  ;;  %v1854_v5 = vadd.f32 1e-12, %v6053_v54  ;;  %v5432_v48 = vld [vmem:[%s5629_s19] sm:$0xff] }
 0x592   : > { %5090 = vmatpush3.bf16.msra.mxu1 %v5087_v27  ;;  %4912 = vmatprep.mubr.msk.f32.mxu1 %vm1103_vm13, %v5981_v29  ;;  %v6190_v43 = vpop.eup %5348  ;;  %v5103_v46 = vpack.c.bf16 %v3488_v1, %v3487_v23  ;;  %v5273_v1 = vld [vmem:[%s5644_s25 + $0x8] sm:$0xff]   ;;  %v5274_v23 = vld [vmem:[%s5644_s25 + $0x10] sm:$0xff]   ;;  %s6382_s25 = sld [smem:[#allocation10_spill]] (!%p4561_p6) }
 0x593   : > { %5096 = vmatprep.subr.bf16.mxu1 %v5095_v36  ;;  %v6193_v61 = vpop.eup %5350  ;;  %v3678_v16 = vmul.f32 %v6190_v43, %v3676_v11  ;;  %4987 = vmatprep.subr.bf16.mxu0 %v5468_v24  ;;  %v6238_v33 = vpop.permute.xlu1 %1481 }
 0x594   : > { %v3677_v20 = vmul.f32 %v6193_v61, %v3675_v49 }
 0x595   : > { %4913 = vmatmul.mubr.msk.f32.vlgmr.msra.gmra.mrb[34].mxu1 %vm1103_vm13, %v6043_v45  ;;  %4988 = vmatpush3.bf16.msra.mxu0 %v5273_v1  ;;  %v1090_v1 = vrot.slane %v5432_v48, %v5859_v14 }
 0x596   : > { %5098 = vmatpush3.bf16.msra.mxu1 %v5095_v36  ;;  %4926 = vmatprep.mubr.msk.f32.mxu1 %vm1103_vm13, %v5981_v29  ;;  %v6202_v27 = vpop.eup %5352  ;;  %v5111_v35 = vpack.c.bf16 %v3678_v16, %v3677_v20  ;;  %v1292_v16 = vpop.permute.xlu0 %1291 }
 0x597   : > { %5104 = vmatprep.subr.bf16.mxu1 %v5103_v46  ;;  %v6206_v37 = vpop.eup %5354  ;;  %v3868_v30 = vmul.f32 %v6202_v27, %v3866_v21  ;;  %4989 = vmatprep.subr.bf16.mxu0 %v5468_v24  ;;  %v6243_v11 = vpop.permute.xlu1 %1671 }
 0x598   : > { %v3867_v51 = vmul.f32 %v6206_v37, %v3865_v28  ;;  %v1285_v28 = vadd.f32 1e-12, %v6012_v41  ;;  %v1664_v41 = vadd.f32 1e-12, %v6034_v34 }
 0x599   : > { %4927 = vmatmul.mubr.msk.f32.vlgmr.msra.gmra.mrb[36].mxu1 %vm1103_vm13, %v6043_v45  ;;  %4990 = vmatpush3.bf16.msra.mxu0 %v5274_v23 }
 0x59a   : > { %5106 = vmatpush3.bf16.msra.mxu1 %v5103_v46  ;;  %4940 = vmatprep.mubr.msk.f32.mxu1 %vm1103_vm13, %v5981_v29  ;;  %v6215_v8 = vpop.eup %5356  ;;  %v5119_v58 = vpack.c.bf16 %v3868_v30, %v3867_v51  ;;  %v6257_v20 = vpop.permute.xlu0 %1861  ;;  %5360 = vrcp.f32 %v1285_v28  ;;  %v1474_v51 = vadd.f32 1e-12, %v6025_v17  ;;  %v2045_v28 = vadd.f32 1e-12, %v6063_v63 }
 0x59b   : > { %5112 = vmatprep.subr.bf16.mxu1 %v5111_v35  ;;  %v6218_v32 = vpop.eup %5358  ;;  %v4058_v36 = vmul.f32 %v6215_v8, %v4056_v53  ;;  %4991 = vmatprep.subr.bf16.mxu0 %v5468_v24  ;;  %v1284_v24 = vadd.f32 1e-12, %v6021_v12 }
 0x59c   : > { %v4057_v39 = vmul.f32 %v6218_v32, %v4055_v40  ;;  %v1665_v40 = vadd.f32 1e-12, %v6030_v26 }
 0x59d   : > { %4941 = vmatmul.mubr.msk.f32.vlgmr.msra.gmra.mrb[38].mxu1 %vm1103_vm13, %v6043_v45  ;;  %4992 = vmatpush3.bf16.msra.mxu0 %v5275_v0  ;;  %5362 = vrcp.f32 %v1284_v24 }
 0x59e   : > { %5114 = vmatpush3.bf16.msra.mxu1 %v5111_v35  ;;  %4954 = vmatprep.mubr.msk.f32.mxu1 %vm1103_vm13, %v5981_v29  ;;  %v5127_v59 = vpack.c.bf16 %v4058_v36, %v4057_v39  ;;  %v6263_v35 = vpop.permute.xlu0 %2431  ;;  %5364 = vrcp.f32 %v1475_v50 }
 0x59f   : > { %5120 = vmatprep.subr.bf16.mxu1 %v5119_v58  ;;  %5366 = vrcp.f32 %v1474_v51 }
 0x5a0   : > { %5368 = vrcp.f32 %v1665_v40 }
 0x5a1   : > { %4955 = vmatmul.mubr.msk.f32.vlgmr.msra.gmra.mrb[40].mxu1 %vm1103_vm13, %v6043_v45  ;;  %5370 = vrcp.f32 %v1664_v41  ;;  %v1092_v41 = vmul.f32 %v1090_v1, %v5744_v7 }
 0x5a2   : > { %5122 = vmatpush3.bf16.msra.mxu1 %v5119_v58  ;;  %4968 = vmatprep.mubr.msk.f32.mxu1 %vm1103_vm13, %v5981_v29  ;;  %v6269_v53 = vpop.permute.xlu0 %3001  ;;  %v1855_v58 = vadd.f32 1e-12, %v6047_v47  ;;  %v2044_v47 = vadd.f32 1e-12, %v6068_v10  ;;  %v2234_v10 = vadd.f32 1e-12, %v6081_v38 }
 0x5a3   : > { %5128 = vmatprep.subr.bf16.mxu1 %v5127_v59 }
 0x5a4   : > { %v5361_v36 = vpop.eup %5360  ;;  %5372 = vrcp.f32 %v1855_v58  ;;  %v2235_v58 = vadd.f32 1e-12, %v6077_v18  ;;  %v2425_v18 = vadd.f32 1e-12, %v6093_v55  ;;  %v2614_v55 = vadd.f32 1e-12, %v6113_v9 }
 0x5a5   : > { %4969 = vmatmul.mubr.msk.f32.vlgmr.msra.gmra.mrb[42].mxu1 %vm1103_vm13, %v6043_v45  ;;  %5374 = vrcp.f32 %v1854_v5 }
 0x5a6   : > { %5130 = vmatpush3.bf16.msra.mxu1 %v5127_v59  ;;  %4982 = vmatprep.mubr.msk.f32.mxu1 %vm1103_vm13, %v5981_v29  ;;  %v6247_v29 = vpop.permute.xlu1 %2051  ;;  %v6277_v39 = vpop.permute.xlu0 %3571  ;;  %5376 = vrcp.f32 %v2045_v28 }
 0x5a7   : > { %v5363_v59 = vpop.eup %5362  ;;  %5378 = vrcp.f32 %v2044_v47 }
 0x5a8   : > { %v5365_v54 = vpop.eup %5364  ;;  %5380 = vrcp.f32 %v2235_v58 }
 0x5a9   : > { %4983 = vmatmul.mubr.msk.f32.vlgmr.msra.gmra.mrb[44].mxu1 %vm1103_vm13, %v6043_v45  ;;  %v5367_v40 = vpop.eup %5366  ;;  %5382 = vrcp.f32 %v2234_v10 }
 0x5aa   : > { %v6249_v45 = vpop.permute.xlu1 %2241  ;;  %v1486_v14 = vpop.permute.xlu0 %1485  ;;  %5384 = vrcp.f32 %v2425_v18 }
 0x5ab   : > { %v5369_v5 = vpop.eup %5368 }
 0x5ae   : > { %v6251_v46 = vpop.permute.xlu1 %2621 }
 0x5b2   : > { %v6253_v49 = vpop.permute.xlu1 %2811 }
 0x5b6   : > { %v6255_v60 = vpop.permute.xlu1 %3191 }
 0x5ba   : > { %v6259_v21 = vpop.permute.xlu1 %3381 }
 0x5be   : > { %v6265_v30 = vpop.permute.xlu1 %3761 }
 0x5c2   : > { %v6273_v12 = vpop.permute.xlu1 %3951 }
 0x5c3   : > { %6380 = vst [vmem:[#allocation8_spill] sm:$0xff] %v6273_v12 }
 0x5c6   : > { %v1296_v0 = vpop.permute.xlu1 %1295 }
 0x640   : > { %v4774_v17 = vpop.f32.mrb[14].mxu1 }
 0x641   : > { %v1289_v26 = vmul.f32 %v5361_v36, %v4774_v17  ;;  %v1275_v23 = vpop.f32.mrb[15].mxu1  ;;  %v1091_v36 = vmul.f32 %v1090_v1, %v5742_v6 }
 0x642   : > { %v1288_v34 = vmul.f32 %v5363_v59, %v1275_v23  ;;  %v5371_v23 = vpop.eup %5370 }
 0x643   : > { %v1299_v24 = vmul.f32 %v1296_v0, %v1289_v26  ;;  %v5373_v38 = vpop.eup %5372 }
 0x644   : > { %v1298_v50 = vmul.f32 %v1292_v16, %v1288_v34  ;;  %v4788_v51 = vpop.f32.mrb[16].mxu1  ;;  %v1676_v16 = vpop.permute.xlu1 %1675 }
 0x645   : > { %v1479_v62 = vmul.f32 %v5365_v54, %v4788_v51  ;;  %v1465_v12 = vpop.f32.mrb[17].mxu1  ;;  %v1301_v63 = vadd.f32 %v1299_v24, %v1092_v41  ;;  %v5375_v47 = vpop.eup %5374 }
 0x646   : > { %v1478_v17 = vmul.f32 %v5367_v40, %v1465_v12  ;;  %v1300_v48 = vadd.f32 %v1298_v50, %v1091_v36  ;;  %v2615_v36 = vadd.f32 1e-12, %v6109_v25  ;;  %v5377_v58 = vpop.eup %5376  ;;  %v2804_v25 = vadd.f32 1e-12, %v6126_v22 }
 0x647   : > { %v1489_v59 = vmul.f32 %v1486_v14, %v1479_v62  ;;  %v2424_v62 = vadd.f32 1e-12, %v6099_v52 }
 0x648   : > { %v1488_v26 = vmul.f32 %v6238_v33, %v1478_v17  ;;  %v4802_v7 = vpop.f32.mrb[18].mxu1  ;;  %v1866_v40 = vpop.permute.xlu1 %1865 }
 0x649   : > { %v1491_v0 = vadd.f32 %v1489_v59, %v1301_v63  ;;  %v1669_v34 = vmul.f32 %v5369_v5, %v4802_v7  ;;  %v1655_v54 = vpop.f32.mrb[19].mxu1  ;;  %5386 = vrcp.f32 %v2424_v62  ;;  %v2805_v7 = vadd.f32 1e-12, %v6122_v13 }
 0x64a   : > { %v1490_v6 = vadd.f32 %v1488_v26, %v1300_v48  ;;  %v1668_v12 = vmul.f32 %v5371_v23, %v1655_v54  ;;  %5388 = vrcp.f32 %v2615_v36  ;;  %v2994_v13 = vadd.f32 1e-12, %v6142_v56 }
 0x64b   : > { %v1679_v1 = vmul.f32 %v1676_v16, %v1669_v34  ;;  %v2056_v16 = vpop.permute.xlu0 %2055  ;;  %5390 = vrcp.f32 %v2614_v55  ;;  %v3184_v56 = vadd.f32 1e-12, %v6155_v15  ;;  %v3374_v15 = vadd.f32 1e-12, %v6168_v2 }
 0x64c   : > { %v1678_v28 = vmul.f32 %v6243_v11, %v1668_v12  ;;  %v4816_v24 = vpop.f32.mrb[20].mxu1  ;;  %v5379_v11 = vpop.eup %5378  ;;  %5392 = vrcp.f32 %v2805_v7  ;;  %v3564_v2 = vadd.f32 1e-12, %v6181_v4 }
 0x64d   : > { %v1681_v33 = vadd.f32 %v1679_v1, %v1491_v0  ;;  %v1859_v50 = vmul.f32 %v5373_v38, %v4816_v24  ;;  %v1845_v51 = vpop.f32.mrb[21].mxu1  ;;  %v5381_v0 = vpop.eup %5380  ;;  %v2995_v38 = vadd.f32 1e-12, %v6138_v44  ;;  %5394 = vrcp.f32 %v2804_v25 }
 0x64e   : > { %v1680_v41 = vadd.f32 %v1678_v28, %v1490_v6  ;;  %v1858_v14 = vmul.f32 %v5375_v47, %v1845_v51  ;;  %v2246_v9 = vpop.permute.xlu1 %2245  ;;  %v5383_v54 = vpop.eup %5382  ;;  %v3185_v44 = vadd.f32 1e-12, %v6151_v3  ;;  %v3375_v3 = vadd.f32 1e-12, %v6164_v19 }
 0x64f   : > { %v1869_v17 = vmul.f32 %v1866_v40, %v1859_v50  ;;  %v5385_v24 = vpop.eup %5384  ;;  %5396 = vrcp.f32 %v2995_v38  ;;  %v3565_v19 = vadd.f32 1e-12, %v6177_v57 }
 0x650   : > { %v1868_v52 = vmul.f32 %v6257_v20, %v1858_v14  ;;  %v4830_v63 = vpop.f32.mrb[22].mxu1  ;;  %5398 = vrcp.f32 %v2994_v13 }
 0x651   : > { %v1871_v59 = vadd.f32 %v1869_v17, %v1681_v33  ;;  %v2049_v10 = vmul.f32 %v5377_v58, %v4830_v63  ;;  %v2035_v5 = vpop.f32.mrb[23].mxu1  ;;  %5400 = vrcp.f32 %v3185_v44 }
 0x652   : > { %v1870_v48 = vadd.f32 %v1868_v52, %v1680_v41  ;;  %v2048_v26 = vmul.f32 %v5379_v11, %v2035_v5  ;;  %v2436_v41 = vpop.permute.xlu1 %2435  ;;  %5402 = vrcp.f32 %v3184_v56 }
 0x653   : > { %v2059_v23 = vmul.f32 %v2056_v16, %v2049_v10  ;;  %v5387_v33 = vpop.eup %5386  ;;  %v2626_v16 = vpop.permute.xlu0 %2625 }
 0x654   : > { %v2058_v34 = vmul.f32 %v6247_v29, %v2048_v26  ;;  %v4844_v20 = vpop.f32.mrb[24].mxu1  ;;  %v4153_v29 = vsub.f32 0.0, %v5738_v42  ;;  %v5389_v55 = vpop.eup %5388 }
 0x655   : > { %v2061_v6 = vadd.f32 %v2059_v23, %v1871_v59  ;;  %v2239_v12 = vmul.f32 %v5381_v0, %v4844_v20  ;;  %v2225_v18 = vpop.f32.mrb[25].mxu1  ;;  %v5391_v63 = vpop.eup %5390 }
 0x656   : > { %v2060_v1 = vadd.f32 %v2058_v34, %v1870_v48  ;;  %v2238_v62 = vmul.f32 %v5383_v54, %v2225_v18  ;;  %v4156_v11 = vmul.f32 1.442695, %v4153_v29  ;;  %v5393_v23 = vpop.eup %5392  ;;  %v2816_v0 = vpop.permute.xlu1 %2815 }
 0x657   : > { %v2249_v28 = vmul.f32 %v2246_v9, %v2239_v12  ;;  %v5395_v34 = vpop.eup %5394 }
 0x658   : > { %v2248_v22 = vmul.f32 %v6249_v45, %v2238_v62  ;;  %v4858_v47 = vpop.f32.mrb[26].mxu1  ;;  %v4152_v45 = vsub.f32 0.0, %v5736_v31  ;;  %5404 = vpow2.f32 %v4156_v11 }
 0x659   : > { %v2251_v50 = vadd.f32 %v2249_v28, %v2061_v6  ;;  %v2429_v51 = vmul.f32 %v5385_v24, %v4858_v47  ;;  %v2415_v40 = vpop.f32.mrb[27].mxu1  ;;  %5406 = vrcp.f32 %v3375_v3  ;;  %v5397_v62 = vpop.eup %5396 }
 0x65a   : > { %v2250_v14 = vadd.f32 %v2248_v22, %v2060_v1  ;;  %v2428_v36 = vmul.f32 %v5387_v33, %v2415_v40  ;;  %v4154_v25 = vmul.f32 1.442695, %v4152_v45  ;;  %5408 = vrcp.f32 %v3374_v15  ;;  %v5399_v28 = vpop.eup %5398  ;;  %v3006_v47 = vpop.permute.xlu1 %3005 }
 0x65b   : > { %v2439_v17 = vmul.f32 %v2436_v41, %v2429_v51  ;;  %v3754_v51 = vadd.f32 1e-12, %v6193_v61  ;;  %v5401_v4 = vpop.eup %5400  ;;  %v3945_v45 = vadd.f32 1e-12, %v6202_v27  ;;  %v4135_v27 = vadd.f32 1e-12, %v6215_v8 }
 0x65c   : > { %v2438_v58 = vmul.f32 %v6263_v35, %v2428_v36  ;;  %v4872_v52 = vpop.f32.mrb[28].mxu1  ;;  %5410 = vpow2.f32 %v4154_v25  ;;  %v4134_v15 = vadd.f32 1e-12, %v6218_v32 }
 0x65d   : > { %v2441_v59 = vadd.f32 %v2439_v17, %v2251_v50  ;;  %v2619_v10 = vmul.f32 %v5389_v55, %v4872_v52  ;;  %v2605_v5 = vpop.f32.mrb[29].mxu1  ;;  %5412 = vrcp.f32 %v3565_v19  ;;  %v3755_v50 = vadd.f32 1e-12, %v6190_v43  ;;  %v3196_v17 = vpop.permute.xlu0 %3195 }
 0x65e   : > { %v2440_v48 = vadd.f32 %v2438_v58, %v2250_v14  ;;  %v2618_v26 = vmul.f32 %v5391_v63, %v2605_v5  ;;  %5414 = vrcp.f32 %v3564_v2  ;;  %v3944_v52 = vadd.f32 1e-12, %v6206_v37  ;;  %v3386_v63 = vpop.permute.xlu1 %3385 }
 0x65f   : > { %v2629_v7 = vmul.f32 %v2626_v16, %v2619_v10  ;;  %5416 = vrcp.f32 %v3755_v50 }
 0x660   : > { %v2628_v35 = vmul.f32 %v6251_v46, %v2618_v26  ;;  %v4886_v9 = vpop.f32.mrb[30].mxu1  ;;  %5418 = vrcp.f32 %v3754_v51 }
 0x661   : > { %v2631_v20 = vadd.f32 %v2629_v7, %v2441_v59  ;;  %v2809_v54 = vmul.f32 %v5393_v23, %v4886_v9  ;;  %v2795_v6 = vpop.f32.mrb[31].mxu1  ;;  %5420 = vrcp.f32 %v3945_v45 }
 0x662   : > { %v2630_v12 = vadd.f32 %v2628_v35, %v2440_v48  ;;  %v2808_v18 = vmul.f32 %v5395_v34, %v2795_v6  ;;  %5422 = vrcp.f32 %v3944_v52 }
 0x663   : > { %v2819_v1 = vmul.f32 %v2816_v0, %v2809_v54  ;;  %v3576_v54 = vpop.permute.xlu1 %3575  ;;  %5424 = vrcp.f32 %v4135_v27  ;;  %v5433_v27 = vld [vmem:[#allocation2] sm:$0xff] }
 0x664   : > { %v2818_v38 = vmul.f32 %v6253_v49, %v2808_v18  ;;  %v4900_v46 = vpop.f32.mrb[32].mxu1  ;;  %v5403_v49 = vpop.eup %5402  ;;  %5426 = vrcp.f32 %v4134_v15 }
 0x665   : > { %v2821_v13 = vadd.f32 %v2819_v1, %v2631_v20  ;;  %v2999_v24 = vmul.f32 %v5397_v62, %v4900_v46  ;;  %v2985_v22 = vpop.f32.mrb[33].mxu1  ;;  %v5405_v58 = vpop.eup %5404 }
 0x666   : > { %v2820_v33 = vadd.f32 %v2818_v38, %v2630_v12  ;;  %v2998_v29 = vmul.f32 %v5399_v28, %v2985_v22  ;;  %v5407_v61 = vpop.eup %5406  ;;  %v4159_v23 = vadd.f32 1.0, %v5405_v58  ;;  %v3766_v38 = vpop.permute.xlu0 %3765 }
 0x667   : > { %v3009_v57 = vmul.f32 %v3006_v47, %v2999_v24  ;;  %v5409_v59 = vpop.eup %5408  ;;  %v3956_v22 = vpop.permute.xlu1 %3955 }
 0x668   : > { %v3008_v40 = vmul.f32 %v6269_v53, %v2998_v29  ;;  %v4914_v41 = vpop.f32.mrb[34].mxu1  ;;  %v5411_v48 = vpop.eup %5410  ;;  %5428 = vrcp.f32 %v4159_v23  ;;  %v5434_v23 = vld [vmem:[#allocation2 + $0x8] sm:$0xff] }
 0x669   : > { %v3011_v14 = vadd.f32 %v3009_v57, %v2821_v13  ;;  %v3189_v36 = vmul.f32 %v5401_v4, %v4914_v41  ;;  %v3175_v44 = vpop.f32.mrb[35].mxu1  ;;  %v5413_v37 = vpop.eup %5412  ;;  %v4158_v35 = vadd.f32 1.0, %v5411_v48 }
 0x66a   : > { %v3010_v56 = vadd.f32 %v3008_v40, %v2820_v33  ;;  %v3188_v55 = vmul.f32 %v5403_v49, %v3175_v44  ;;  %v5415_v0 = vpop.eup %5414  ;;  %v6381_v49 = vld [vmem:[#allocation8_spill] sm:$0xff] }
 0x66b   : > { %v3199_v43 = vmul.f32 %v3196_v17, %v3189_v36  ;;  %v5417_v8 = vpop.eup %5416  ;;  %5430 = vrcp.f32 %v4158_v35  ;;  %v4146_v58 = vpop.permute.xlu1 %4145 }
 0x66c   : > { %v3198_v53 = vmul.f32 %v6255_v60, %v3188_v55  ;;  %v4928_v11 = vpop.f32.mrb[36].mxu1  ;;  %v5419_v1 = vpop.eup %5418 }
 0x66d   : > { %v3201_v10 = vadd.f32 %v3199_v43, %v3011_v14  ;;  %v3379_v5 = vmul.f32 %v5407_v61, %v4928_v11  ;;  %v3365_v16 = vpop.f32.mrb[37].mxu1  ;;  %v5421_v24 = vpop.eup %5420 }
 0x66e   : > { %v3200_v26 = vadd.f32 %v3198_v53, %v3010_v56  ;;  %v3378_v3 = vmul.f32 %v5409_v59, %v3365_v16  ;;  %v5423_v29 = vpop.eup %5422  ;;  %v4142_v61 = vpop.permute.xlu0 %4141 }
 0x66f   : > { %v3389_v7 = vmul.f32 %v3386_v63, %v3379_v5  ;;  %v5425_v41 = vpop.eup %5424 }
 0x670   : > { %v3388_v25 = vmul.f32 %v6259_v21, %v3378_v3  ;;  %v4942_v60 = vpop.f32.mrb[38].mxu1  ;;  %v5427_v44 = vpop.eup %5426 }
 0x671   : > { %v3391_v9 = vadd.f32 %v3389_v7, %v3201_v10  ;;  %v3569_v34 = vmul.f32 %v5413_v37, %v4942_v60  ;;  %v3555_v20 = vpop.f32.mrb[39].mxu1 }
 0x672   : > { %v3390_v6 = vadd.f32 %v3388_v25, %v3200_v26  ;;  %v3568_v12 = vmul.f32 %v5415_v0, %v3555_v20  ;;  %v5429_v45 = vpop.eup %5428  ;;  %v5504_v20 = vmov (!%p4561_p6), 0.0  }
 0x673   : > { %v3579_v18 = vmul.f32 %v3576_v54, %v3569_v34  ;;  %v4165_v11 = vmul.f32 %v5429_v45, %v5738_v42  ;;  %4997 = vmatprep.subr.bf16.mxu0 (!%p4561_p6), %v5504_v20  ;;  %v4280_v54 = vld [vmem:[#allocation3] sm:$0x1] (!%p4561_p6) }
 0x674   : > { %v3578_v32 = vmul.f32 %v6277_v39, %v3568_v12  ;;  %v4956_v19 = vpop.f32.mrb[40].mxu1 }
 0x675   : > { %v3581_v21 = vadd.f32 %v3579_v18, %v3391_v9  ;;  %v3759_v2 = vmul.f32 %v5417_v8, %v4956_v19  ;;  %v3745_v62 = vpop.f32.mrb[41].mxu1  ;;  %v5431_v52 = vpop.eup %5430 }
 0x676   : > { %v3580_v46 = vadd.f32 %v3578_v32, %v3390_v6  ;;  %v3758_v28 = vmul.f32 %v5419_v1, %v3745_v62  ;;  %v4164_v10 = vmul.f32 %v5431_v52, %v5736_v31  ;;  %v5506_v6 = vmov (!%p4561_p6), 0  }
 0x677   : > { %v3769_v13 = vmul.f32 %v3766_v38, %v3759_v2  ;;  %5435 = vset.pattern.permute.xlu1 (!%p4561_p6), %v5506_v6  ;;  %5436 = vset.pattern.permute.xlu0 (!%p4561_p6), %v5506_v6  ;;  %v4562_v38 = vld [vmem:[%s6382_s25] ss:$0 sm:$0xff] (!%p4561_p6) }
 0x678   : > { %v3768_v47 = vmul.f32 %v6265_v30, %v3758_v28  ;;  %v4970_v33 = vpop.f32.mrb[42].mxu1  ;;  %4283 = vperm.xlu1 (!%p4561_p6), %5435, %v4280_v54  }
 0x679   : > { %v3771_v50 = vadd.f32 %v3769_v13, %v3581_v21  ;;  %v3949_v57 = vmul.f32 %v5421_v24, %v4970_v33  ;;  %v3935_v51 = vpop.f32.mrb[43].mxu1 }
 0x67a   : > { %v3770_v39 = vadd.f32 %v3768_v47, %v3580_v46  ;;  %v3948_v4 = vmul.f32 %v5423_v29, %v3935_v51  ;;  %v4279_v47 = vld [vmem:[%s6383_s14] sm:$0x1] (!%p4561_p6)  ;;  %v6384_v29 = vld [vmem:[#allocation7_spill] sm:$0xff] (!%p4561_p6) }
 0x67b   : > { %v3959_v40 = vmul.f32 %v3956_v22, %v3949_v57 }
 0x67c   : > { %v3958_v14 = vmul.f32 %v6381_v49, %v3948_v4  ;;  %v4984_v36 = vpop.f32.mrb[44].mxu1 }
 0x67d   : > { %v3961_v17 = vadd.f32 %v3959_v40, %v3771_v50  ;;  %v4139_v56 = vmul.f32 %v5425_v41, %v4984_v36  ;;  %v4125_v55 = vpop.f32.mrb[45].mxu1 }
 0x67e   : > { %v3960_v43 = vadd.f32 %v3958_v14, %v3770_v39  ;;  %v4138_v30 = vmul.f32 %v5427_v44, %v4125_v55 }
 0x67f   : > { %v4149_v63 = vmul.f32 %v4146_v58, %v4139_v56 }
 0x680   : > { %v4148_v53 = vmul.f32 %v4142_v61, %v4138_v30 }
 0x681   : > { %v4151_v59 = vadd.f32 %v4149_v63, %v3961_v17 }
 0x682   : > { %v4150_v5 = vadd.f32 %v4148_v53, %v3960_v43 }
 0x683   : > { %v4167_v16 = vmul.f32 %v4165_v11, %v4151_v59 }
 0x684   : > { %v4166_v48 = vmul.f32 %v4164_v10, %v4150_v5 }
 0x686   : > { %v4168_v26 = vpack.c.bf16 %v4167_v16, %v4166_v48 }
 0x688   : > { %4994 = vmatmul.mubr.msk.bf16.vlgmr.msra.gmra.mrb[36].mxu0 %vm971_vm10, %v4168_v26 }
 0x689   : > { %4999 = vmatprep.mubr.msk.bf16.mxu0 (!%p4561_p6), %vm5505_vm0, %v5504_v20 }
 0x6f7   : > { %v4284_v33 = vpop.permute.xlu1 (!%p4561_p6), %4283 }
 0x6f8   : > { %v4289_v50 = vrot.slane (!%p4561_p6), %v4284_v33, %v6384_v29 }
 0x75a   : > { %4250 = sbr.rel (%p4561_p6) target bundleno = 2287 (0x8ef), region = 88 }
 0x75b   : > { %v4238_v3 = vpop.f32.mrb[36].mxu0 }
 0x75c   : > { %v4239_v7 = vadd.f32 %v5433_v27, %v4238_v3  ;;  %v4995_v15 = vpop.f32.mrb[37].mxu0 }
 0x75d   : > { %v4241_v37 = vpop.f32.mrb[38].mxu0 }
 0x75e   : > { %4245 = vst.msk [vmem:[#allocation2] sm:$0xff] %vm697_vm5, %v4239_v7  ;;  %v4242_v25 = vadd.f32 %v5434_v23, %v4241_v37  ;;  %v4996_v60 = vpop.f32.mrb[39].mxu0 }
 0x760   : > { %4246 = vst.msk [vmem:[#allocation2 + $0x8] sm:$0xff] %vm697_vm5, %v4242_v25 }
 0x765   : > { %v4251_v31 = vld [vmem:[#allocation2] sm:$0xff] }
 0x766   : > { %v4253_v0 = vmul.f32 %v4251_v31, %v4251_v31 }
 0x767   : > { %v4252_v42 = vld [vmem:[#allocation2 + $0x8] sm:$0xff] }
 0x768   : > { %v4254_v35 = vmul.f32 %v4252_v42, %v4252_v42  ;;  %v4255_v9 = vsel %vm697_vm5, %v4253_v0, 0.0 }
 0x769   : > { %4256 = vadd.xlane.f32.xlu0 %v4255_v9 }
 0x76a   : > { %v4258_v34 = vsel %vm697_vm5, %v4254_v35, 0.0 }
 0x76d   : > { %4259 = vadd.xlane.f32.xlu0 %v4258_v34 }
 0x7f6   : > { %v4257_v12 = vpop.xlane.xlu0 %4256 }
 0x7f7   : > { %v4261_v18 = vmul.f32 0.03125, %v4257_v12 }
 0x7f9   : > { %v4263_v8 = vadd.f32 1e-05, %v4261_v18 }
 0x7fa   : > { %v4260_v32 = vpop.xlane.xlu0 %4259 }
 0x7fb   : > { %5437 = vrsqrt.f32 %v4263_v8  ;;  %v4262_v19 = vmul.f32 0.03125, %v4260_v32 }
 0x7fd   : > { %v4264_v1 = vadd.f32 1e-05, %v4262_v19 }
 0x7ff   : > { %5439 = vrsqrt.f32 %v4264_v1 }
 0x805   : > { %v5438_v21 = vpop.eup %5437 }
 0x806   : > { %v4267_v2 = vmul.f32 %v5438_v21, %v4251_v31 }
 0x808   : > { %v4276_v28 = vmul.f32 %v4562_v38, %v4267_v2 }
 0x809   : > { %v5440_v62 = vpop.eup %5439 }
 0x80a   : > { %v4268_v46 = vmul.f32 %v5440_v62, %v4252_v42 }
 0x80c   : > { %v4277_v13 = vmul.f32 %v4562_v38, %v4268_v46 }
 0x80e   : > { %v4278_v24 = vpack.c.bf16 %v4277_v13, %v4276_v28 }
 0x810   : > { %v4294_v22 = vsel %vm697_vm5, %v4278_v24, 0 }
 0x811   : > { %4998 = vmatpush3.bf16.xpose.msra.mxu0 %v4294_v22 }
 0x818   : > { %5000 = vmatmul.mubr.msk.bf16.vlgmr.msra.gmra.mrb[0].mxu0 %vm697_vm5, %v4279_v47 }
 0x8eb   : > { %v4330_v57 = vpop.f32.mrb[0].mxu0 }
 0x8ec   : > { %v4331_v51 = vadd.f32 %v4330_v57, %v4289_v50  ;;  %v5001_v39 = vpop.f32.mrb[1].mxu0 }
 0x8ed   : > { %v4333_v4 = vpop.f32.mrb[2].mxu0 }
 0x8ee   : > { %4337 = vst.msk [vmem:[%s6385_s28] sm:$0x1] %vm4336_vm1, %v4331_v51  ;;  %v5002_v40 = vpop.f32.mrb[3].mxu0 }
 0x8ef PF: > { %s6386_s18 = sld [smem:[#allocation5_spill]]  ;;  %s6387_s20 = sld [smem:[#allocation4_spill]] }
 0x8f0   : > { %s6388_s21 = sld [smem:[#allocation6_spill]] }
 0x8f5   : > { %s27_s22 = sadd.s32 1, %s6386_s18  }
 0x8f6   : > { %p24_p7 = scmp.ge.s32.totalorder %s27_s22, 4  }
 0x8f8   :  { %26 = sbr.rel (!%p24_p7) target bundleno = 5 (0x5), region = 136 }

</bundles_post_ra>
